<compile_context>
chip_gen: v5e
topology: v5e:2x2
jax: 0.10.0
libtpu: 0.0.40
codegen_flags: <defaults>
</compile_context>

<pallas_src>
import jax
import jax.numpy as jnp
from jax import lax
from jax.experimental import pallas as pl
from jax.experimental.pallas import tpu as pltpu


def _att_layer_kernel(x_ref, y_ref, wq_ref, wk_ref, wv_ref, bq_ref, bk_ref,
                      bv_ref, gamma_ref, o_ref):
    # x_ref/y_ref/o_ref: (Bblk, C, N); wq/wk: (Ch, C); wv: (C+1, C) (last row zeros);
    # bq/bk: (Ch, 1); bv: (C+1, 1) (last entry 1.0); gamma: (1,) SMEM scalar.
    Bblk, C, N = x_ref.shape
    gamma = gamma_ref[0]

    wq = wq_ref[...].astype(jnp.float32)
    wk = wk_ref[...].astype(jnp.float32)
    wv = wv_ref[...].astype(jnp.float32)
    bq = bq_ref[...].astype(jnp.float32)
    bk = bk_ref[...].astype(jnp.float32)
    bv = bv_ref[...].astype(jnp.float32)

    def conv1x1(w, b, src):
        # 1x1 conv == per-pixel linear layer.  Contraction depth C is tiny, so
        # do it as C broadcast-FMAs on the VPU and keep the MXU free.
        out = None
        for c in range(C):
            term = w[:, c:c + 1] * src[c:c + 1, :]          # (O, 1) * (1, N) -> (O, N)
            out = term if out is None else out + term
        return out + b                                       # (O, N) + (O, 1)

    for b in range(Bblk):
        xb = x_ref[b].astype(jnp.float32)                    # (C, N)
        yb = y_ref[b].astype(jnp.float32)                    # (C, N)

        q = conv1x1(wq, bq, xb)                              # (Ch, N)
        k = conv1x1(wk, bk, yb)                              # (Ch, N)
        v = conv1x1(wv, bv, yb)                              # (C+1, N), last row == 1

        # energy[i, j] = sum_c q[c, i] * k[c, j]   (== Q^T @ K), f32 accumulate.
        energy = lax.dot_general(q, k, (((0,), (0,)), ((), ())),
                                 preferred_element_type=jnp.float32)   # (N, N)
        energy = energy - jnp.max(energy, axis=-1, keepdims=True)
        p = jnp.exp(energy)                                  # un-normalized probs (N, N)

        # Deferred normalization: the appended ones-row of v makes the last row
        # of out_aug equal to the softmax row sums, already laid out as (1, N).
        out_aug = lax.dot_general(v.astype(jnp.bfloat16), p.astype(jnp.bfloat16),
                                  (((1,), (1,)), ((), ())),
                                  preferred_element_type=jnp.float32)  # (C+1, N)
        inv_l = pl.reciprocal(out_aug[C:C + 1, :], approx=True)        # (1, N), EUP
        attn_out = out_aug[:C, :] * inv_l                              # (C, N)

        o_ref[b] = (gamma * attn_out + yb).astype(o_ref.dtype)


def _pick_bblk(B, C, N, itemsize):
    """Largest divisor of B that fits a conservative VMEM budget, keeping >= 2 grid steps."""
    per_b = (N * N * 6                      # energy (f32) + p (bf16)
             + 4 * 4 * (C + 1) * N          # q, k, v_aug and small f32 temps
             + 2 * 3 * C * N * itemsize)    # double-buffered x, y, out blocks
    budget = 24 * 1024 * 1024               # headroom below the 32 MiB scoped default
    cap = max(1, budget // max(per_b, 1))
    cap = min(cap, 8, B)
    if B >= 2:
        cap = max(1, min(cap, B // 2))      # keep >= 2 grid steps (v7x dual TC)
    bblk = 1
    for d in range(1, cap + 1):
        if B % d == 0:
            bblk = d
    return bblk


def att_layer(x, y, wq, bq, wk, bk, wv, bv, gamma):
    """x: (B,C[,W[,H]]); y: (B,C,W,H); wq/wk: (C//2,C); wv: (C,C); b*: 1D; gamma: scalar."""
    orig_ndim = x.ndim
    if orig_ndim == 2:
        x4 = x[:, :, None, None]
    elif orig_ndim == 3:
        x4 = x[:, :, :, None]
    else:
        x4 = x
    assert y.shape == x4.shape, "y must match the (B, C, W, H) shape of x"

    B, C, W, H = x4.shape
    Ch = wq.shape[0]
    N = W * H

    # Glue reshapes in plain JAX: flatten spatial dims so the kernel's last dim
    # (N = W*H) is lane-dense when it is a multiple of 128.
    xf = x4.reshape(B, C, N)
    yf = y.reshape(B, C, N)

    # Augment the value conv with an extra output channel of weight 0 / bias 1:
    # its output row is identically 1, so V_aug @ p^T also yields the softmax
    # row sums (deferred normalization) in the right layout.
    wv_aug = jnp.concatenate(
        [wv.astype(jnp.float32), jnp.zeros((1, C), jnp.float32)], axis=0)   # (C+1, C)
    bv_aug = jnp.concatenate(
        [bv.astype(jnp.float32).reshape(C, 1), jnp.ones((1, 1), jnp.float32)],
        axis=0)                                                             # (C+1, 1)
    bq2 = bq.astype(jnp.float32).reshape(Ch, 1)
    bk2 = bk.astype(jnp.float32).reshape(Ch, 1)
    gamma1 = jnp.asarray(gamma, dtype=jnp.float32).reshape(1)

    Bblk = _pick_bblk(B, C, N, x.dtype.itemsize)
    grid = (B // Bblk,)

    itemsize = x.dtype.itemsize
    flops = int(B * (2 * Ch * N * N            # energy
                     + 2 * (C + 1) * N * N     # V_aug @ p^T
                     + 2 * (2 * Ch + C + 1) * C * N   # 1x1 convs (VPU)
                     + 3 * C * N))             # scale + residual
    transcendentals = int(B * (N * N + N))     # exp + approx reciprocal
    bytes_accessed = int(3 * B * C * N * itemsize
                         + (2 * Ch * C + (C + 1) * C + 2 * Ch + C + 1 + 1) * 4)

    out = pl.pallas_call(
        _att_layer_kernel,
        out_shape=jax.ShapeDtypeStruct((B, C, N), x.dtype),
        grid=grid,
        in_specs=[
            pl.BlockSpec((Bblk, C, N), lambda b: (b, 0, 0)),        # x
            pl.BlockSpec((Bblk, C, N), lambda b: (b, 0, 0)),        # y
            pl.BlockSpec((Ch, C), lambda b: (0, 0)),                # wq
            pl.BlockSpec((Ch, C), lambda b: (0, 0)),                # wk
            pl.BlockSpec((C + 1, C), lambda b: (0, 0)),             # wv (augmented)
            pl.BlockSpec((Ch, 1), lambda b: (0, 0)),                # bq
            pl.BlockSpec((Ch, 1), lambda b: (0, 0)),                # bk
            pl.BlockSpec((C + 1, 1), lambda b: (0, 0)),             # bv (augmented)
            pl.BlockSpec(memory_space=pltpu.MemorySpace.SMEM),      # gamma (scalar)
        ],
        out_specs=pl.BlockSpec((Bblk, C, N), lambda b: (b, 0, 0)),
        compiler_params=pltpu.CompilerParams(
            dimension_semantics=("parallel",)),
        cost_estimate=pl.CostEstimate(flops=flops,
                                      transcendentals=transcendentals,
                                      bytes_accessed=bytes_accessed),
    )(xf, yf, wq, wk, wv_aug, bq2, bk2, bv_aug, gamma1)

    out = out.reshape(B, C, W, H)
    if orig_ndim == 2:
        out = out[:, :, 0, 0]
    elif orig_ndim == 3:
        out = out[:, :, :, 0]
    return out


def _reference(x, y, wq, bq, wk, bk, wv, bv, gamma):
    ndim = x.ndim
    if ndim == 2:
        x = x[:, :, None, None]
    elif ndim == 3:
        x = x[:, :, :, None]
    B, C, W, H = x.shape
    N = W * H
    xf = x.reshape(B, C, N).astype(jnp.float32)
    yf = y.reshape(B, C, N).astype(jnp.float32)
    hp = lax.Precision.HIGHEST
    q = jnp.einsum('oc,bcn->bon', wq, xf, precision=hp) + bq[None, :, None]
    k = jnp.einsum('oc,bcn->bon', wk, yf, precision=hp) + bk[None, :, None]
    v = jnp.einsum('oc,bcn->bon', wv, yf, precision=hp) + bv[None, :, None]
    energy = jnp.einsum('bci,bcj->bij', q, k, precision=hp)
    energy = energy - jnp.max(energy, axis=-1, keepdims=True)
    attn = jnp.exp(energy)
    attn = attn / jnp.sum(attn, axis=-1, keepdims=True)
    out = jnp.einsum('bcj,bij->bci', v, attn, precision=hp)
    out = gamma * out + yf
    out = out.reshape(B, C, W, H).astype(x.dtype)
    if ndim == 2:
        out = out[:, :, 0, 0]
    elif ndim == 3:
        out = out[:, :, :, 0]
    return out


if __name__ == "__main__":
    # Small shapes consistent with the module: in_dim=4 -> query/key out 2 channels.
    B, C, W, H = 2, 4, 16, 16
    Ch = C // 2

    key = jax.random.PRNGKey(0)
    kx, ky, kq, kqb, kk, kkb, kv, kvb = jax.random.split(key, 8)
    x = jax.random.normal(kx, (B, C, W, H), dtype=jnp.float32)
    y = jax.random.normal(ky, (B, C, W, H), dtype=jnp.float32)
    wq = jax.random.normal(kq, (Ch, C), dtype=jnp.float32) * 0.1
    bq = jax.random.normal(kqb, (Ch,), dtype=jnp.float32) * 0.1
    wk = jax.random.normal(kk, (Ch, C), dtype=jnp.float32) * 0.1
    bk = jax.random.normal(kkb, (Ch,), dtype=jnp.float32) * 0.1
    wv = jax.random.normal(kv, (C, C), dtype=jnp.float32) * 0.1
    bv = jax.random.normal(kvb, (C,), dtype=jnp.float32) * 0.1
    # gamma is nn.Parameter(zeros(1)) at init; use a nonzero value so the
    # attention path is actually exercised by the check.
    gamma = jnp.float32(0.5)

    out = att_layer(x, y, wq, bq, wk, bk, wv, bv, gamma)
    out = jax.block_until_ready(out)

    ref = _reference(x, y, wq, bq, wk, bk, wv, bv, gamma)
    assert out.shape == (B, C, W, H)
    assert jnp.allclose(out, ref, atol=1e-3, rtol=1e-3), "mismatch vs reference"
    print("KERNEL_OK")
</pallas_src>

<mosaic_0001>
module attributes {stable_mosaic.version = 11 : i64} {
  func.func @_att_layer_kernel(%arg0: i32, %arg1: memref<1x4x256xf32, #tpu.memory_space<vmem>>, %arg2: memref<1x4x256xf32, #tpu.memory_space<vmem>>, %arg3: memref<2x4xf32, #tpu.memory_space<vmem>>, %arg4: memref<2x4xf32, #tpu.memory_space<vmem>>, %arg5: memref<5x4xf32, #tpu.memory_space<vmem>>, %arg6: memref<2x1xf32, #tpu.memory_space<vmem>>, %arg7: memref<2x1xf32, #tpu.memory_space<vmem>>, %arg8: memref<5x1xf32, #tpu.memory_space<vmem>>, %arg9: memref<1xf32, #tpu.memory_space<smem>>, %arg10: memref<1x4x256xf32, #tpu.memory_space<vmem>>) attributes {dimension_semantics = [#tpu.dimension_semantics<parallel>], iteration_bounds = array<i64: 2>, scalar_prefetch = 0 : i64, scratch_operands = 0 : i64, tpu.core_type = #tpu.core_type<tc>, window_params = [{transform_indices = @transform_0, window_bounds = array<i64: 1, 4, 256>}, {transform_indices = @transform_1, window_bounds = array<i64: 1, 4, 256>}, {pipeline_mode = #tpu.pipeline_mode<synchronous>, transform_indices = @transform_2, window_bounds = array<i64: 2, 4>}, {pipeline_mode = #tpu.pipeline_mode<synchronous>, transform_indices = @transform_3, window_bounds = array<i64: 2, 4>}, {pipeline_mode = #tpu.pipeline_mode<synchronous>, transform_indices = @transform_4, window_bounds = array<i64: 5, 4>}, {pipeline_mode = #tpu.pipeline_mode<synchronous>, transform_indices = @transform_5, window_bounds = array<i64: 2, 1>}, {pipeline_mode = #tpu.pipeline_mode<synchronous>, transform_indices = @transform_6, window_bounds = array<i64: 2, 1>}, {pipeline_mode = #tpu.pipeline_mode<synchronous>, transform_indices = @transform_7, window_bounds = array<i64: 5, 1>}, {transform_indices = @transform_8, window_bounds = array<i64: 1>}, {transform_indices = @transform_9, window_bounds = array<i64: 1, 4, 256>}]} {
    %c0 = arith.constant 0 : index
    %0 = memref.load %arg9[%c0] : memref<1xf32, #tpu.memory_space<smem>>
    %c0_0 = arith.constant 0 : index
    %c0_1 = arith.constant 0 : index
    %1 = vector.load %arg3[%c0_0, %c0_1] : memref<2x4xf32, #tpu.memory_space<vmem>>, vector<2x4xf32>
    %c0_2 = arith.constant 0 : index
    %c0_3 = arith.constant 0 : index
    %2 = vector.load %arg4[%c0_2, %c0_3] : memref<2x4xf32, #tpu.memory_space<vmem>>, vector<2x4xf32>
    %c0_4 = arith.constant 0 : index
    %c0_5 = arith.constant 0 : index
    %3 = vector.load %arg5[%c0_4, %c0_5] : memref<5x4xf32, #tpu.memory_space<vmem>>, vector<5x4xf32>
    %c0_6 = arith.constant 0 : index
    %c0_7 = arith.constant 0 : index
    %4 = vector.load %arg6[%c0_6, %c0_7] : memref<2x1xf32, #tpu.memory_space<vmem>>, vector<2x1xf32>
    %c0_8 = arith.constant 0 : index
    %c0_9 = arith.constant 0 : index
    %5 = vector.load %arg7[%c0_8, %c0_9] : memref<2x1xf32, #tpu.memory_space<vmem>>, vector<2x1xf32>
    %c0_10 = arith.constant 0 : index
    %c0_11 = arith.constant 0 : index
    %6 = vector.load %arg8[%c0_10, %c0_11] : memref<5x1xf32, #tpu.memory_space<vmem>>, vector<5x1xf32>
    %c0_12 = arith.constant 0 : index
    %c0_13 = arith.constant 0 : index
    %c0_14 = arith.constant 0 : index
    %7 = vector.load %arg1[%c0_12, %c0_13, %c0_14] : memref<1x4x256xf32, #tpu.memory_space<vmem>>, vector<1x4x256xf32>
    %8 = vector.shape_cast %7 : vector<1x4x256xf32> to vector<4x256xf32>
    %c0_15 = arith.constant 0 : index
    %c0_16 = arith.constant 0 : index
    %c0_17 = arith.constant 0 : index
    %9 = vector.load %arg2[%c0_15, %c0_16, %c0_17] : memref<1x4x256xf32, #tpu.memory_space<vmem>>, vector<1x4x256xf32>
    %10 = vector.shape_cast %9 : vector<1x4x256xf32> to vector<4x256xf32>
    %11 = vector.extract_strided_slice %1 {offsets = [0, 0], sizes = [2, 1], strides = [1, 1]} : vector<2x4xf32> to vector<2x1xf32>
    %12 = vector.extract_strided_slice %8 {offsets = [0, 0], sizes = [1, 256], strides = [1, 1]} : vector<4x256xf32> to vector<1x256xf32>
    %13 = vector.broadcast %11 : vector<2x1xf32> to vector<2x256xf32>
    %14 = vector.broadcast %12 : vector<1x256xf32> to vector<2x256xf32>
    %15 = arith.mulf %13, %14 : vector<2x256xf32>
    %16 = vector.extract_strided_slice %1 {offsets = [0, 1], sizes = [2, 1], strides = [1, 1]} : vector<2x4xf32> to vector<2x1xf32>
    %17 = vector.extract_strided_slice %8 {offsets = [1, 0], sizes = [1, 256], strides = [1, 1]} : vector<4x256xf32> to vector<1x256xf32>
    %18 = vector.broadcast %16 : vector<2x1xf32> to vector<2x256xf32>
    %19 = vector.broadcast %17 : vector<1x256xf32> to vector<2x256xf32>
    %20 = arith.mulf %18, %19 : vector<2x256xf32>
    %21 = arith.addf %15, %20 : vector<2x256xf32>
    %22 = vector.extract_strided_slice %1 {offsets = [0, 2], sizes = [2, 1], strides = [1, 1]} : vector<2x4xf32> to vector<2x1xf32>
    %23 = vector.extract_strided_slice %8 {offsets = [2, 0], sizes = [1, 256], strides = [1, 1]} : vector<4x256xf32> to vector<1x256xf32>
    %24 = vector.broadcast %22 : vector<2x1xf32> to vector<2x256xf32>
    %25 = vector.broadcast %23 : vector<1x256xf32> to vector<2x256xf32>
    %26 = arith.mulf %24, %25 : vector<2x256xf32>
    %27 = arith.addf %21, %26 : vector<2x256xf32>
    %28 = vector.extract_strided_slice %1 {offsets = [0, 3], sizes = [2, 1], strides = [1, 1]} : vector<2x4xf32> to vector<2x1xf32>
    %29 = vector.extract_strided_slice %8 {offsets = [3, 0], sizes = [1, 256], strides = [1, 1]} : vector<4x256xf32> to vector<1x256xf32>
    %30 = vector.broadcast %28 : vector<2x1xf32> to vector<2x256xf32>
    %31 = vector.broadcast %29 : vector<1x256xf32> to vector<2x256xf32>
    %32 = arith.mulf %30, %31 : vector<2x256xf32>
    %33 = arith.addf %27, %32 : vector<2x256xf32>
    %34 = vector.broadcast %4 : vector<2x1xf32> to vector<2x256xf32>
    %35 = arith.addf %33, %34 : vector<2x256xf32>
    %36 = vector.extract_strided_slice %2 {offsets = [0, 0], sizes = [2, 1], strides = [1, 1]} : vector<2x4xf32> to vector<2x1xf32>
    %37 = vector.extract_strided_slice %10 {offsets = [0, 0], sizes = [1, 256], strides = [1, 1]} : vector<4x256xf32> to vector<1x256xf32>
    %38 = vector.broadcast %36 : vector<2x1xf32> to vector<2x256xf32>
    %39 = vector.broadcast %37 : vector<1x256xf32> to vector<2x256xf32>
    %40 = arith.mulf %38, %39 : vector<2x256xf32>
    %41 = vector.extract_strided_slice %2 {offsets = [0, 1], sizes = [2, 1], strides = [1, 1]} : vector<2x4xf32> to vector<2x1xf32>
    %42 = vector.extract_strided_slice %10 {offsets = [1, 0], sizes = [1, 256], strides = [1, 1]} : vector<4x256xf32> to vector<1x256xf32>
    %43 = vector.broadcast %41 : vector<2x1xf32> to vector<2x256xf32>
    %44 = vector.broadcast %42 : vector<1x256xf32> to vector<2x256xf32>
    %45 = arith.mulf %43, %44 : vector<2x256xf32>
    %46 = arith.addf %40, %45 : vector<2x256xf32>
    %47 = vector.extract_strided_slice %2 {offsets = [0, 2], sizes = [2, 1], strides = [1, 1]} : vector<2x4xf32> to vector<2x1xf32>
    %48 = vector.extract_strided_slice %10 {offsets = [2, 0], sizes = [1, 256], strides = [1, 1]} : vector<4x256xf32> to vector<1x256xf32>
    %49 = vector.broadcast %47 : vector<2x1xf32> to vector<2x256xf32>
    %50 = vector.broadcast %48 : vector<1x256xf32> to vector<2x256xf32>
    %51 = arith.mulf %49, %50 : vector<2x256xf32>
    %52 = arith.addf %46, %51 : vector<2x256xf32>
    %53 = vector.extract_strided_slice %2 {offsets = [0, 3], sizes = [2, 1], strides = [1, 1]} : vector<2x4xf32> to vector<2x1xf32>
    %54 = vector.extract_strided_slice %10 {offsets = [3, 0], sizes = [1, 256], strides = [1, 1]} : vector<4x256xf32> to vector<1x256xf32>
    %55 = vector.broadcast %53 : vector<2x1xf32> to vector<2x256xf32>
    %56 = vector.broadcast %54 : vector<1x256xf32> to vector<2x256xf32>
    %57 = arith.mulf %55, %56 : vector<2x256xf32>
    %58 = arith.addf %52, %57 : vector<2x256xf32>
    %59 = vector.broadcast %5 : vector<2x1xf32> to vector<2x256xf32>
    %60 = arith.addf %58, %59 : vector<2x256xf32>
    %61 = vector.extract_strided_slice %3 {offsets = [0, 0], sizes = [5, 1], strides = [1, 1]} : vector<5x4xf32> to vector<5x1xf32>
    %62 = vector.extract_strided_slice %10 {offsets = [0, 0], sizes = [1, 256], strides = [1, 1]} : vector<4x256xf32> to vector<1x256xf32>
    %63 = vector.broadcast %61 : vector<5x1xf32> to vector<5x256xf32>
    %64 = vector.broadcast %62 : vector<1x256xf32> to vector<5x256xf32>
    %65 = arith.mulf %63, %64 : vector<5x256xf32>
    %66 = vector.extract_strided_slice %3 {offsets = [0, 1], sizes = [5, 1], strides = [1, 1]} : vector<5x4xf32> to vector<5x1xf32>
    %67 = vector.extract_strided_slice %10 {offsets = [1, 0], sizes = [1, 256], strides = [1, 1]} : vector<4x256xf32> to vector<1x256xf32>
    %68 = vector.broadcast %66 : vector<5x1xf32> to vector<5x256xf32>
    %69 = vector.broadcast %67 : vector<1x256xf32> to vector<5x256xf32>
    %70 = arith.mulf %68, %69 : vector<5x256xf32>
    %71 = arith.addf %65, %70 : vector<5x256xf32>
    %72 = vector.extract_strided_slice %3 {offsets = [0, 2], sizes = [5, 1], strides = [1, 1]} : vector<5x4xf32> to vector<5x1xf32>
    %73 = vector.extract_strided_slice %10 {offsets = [2, 0], sizes = [1, 256], strides = [1, 1]} : vector<4x256xf32> to vector<1x256xf32>
    %74 = vector.broadcast %72 : vector<5x1xf32> to vector<5x256xf32>
    %75 = vector.broadcast %73 : vector<1x256xf32> to vector<5x256xf32>
    %76 = arith.mulf %74, %75 : vector<5x256xf32>
    %77 = arith.addf %71, %76 : vector<5x256xf32>
    %78 = vector.extract_strided_slice %3 {offsets = [0, 3], sizes = [5, 1], strides = [1, 1]} : vector<5x4xf32> to vector<5x1xf32>
    %79 = vector.extract_strided_slice %10 {offsets = [3, 0], sizes = [1, 256], strides = [1, 1]} : vector<4x256xf32> to vector<1x256xf32>
    %80 = vector.broadcast %78 : vector<5x1xf32> to vector<5x256xf32>
    %81 = vector.broadcast %79 : vector<1x256xf32> to vector<5x256xf32>
    %82 = arith.mulf %80, %81 : vector<5x256xf32>
    %83 = arith.addf %77, %82 : vector<5x256xf32>
    %84 = vector.broadcast %6 : vector<5x1xf32> to vector<5x256xf32>
    %85 = arith.addf %83, %84 : vector<5x256xf32>
    %cst = arith.constant dense<0.000000e+00> : vector<256x256xf32>
    %86 = tpu.matmul %35, %60, %cst {dimension_numbers = #tpu.dot_dimension_numbers<[0], [0], [1], [1], [0, 1, 1, 1], [], []>} : vector<2x256xf32>, vector<2x256xf32>, vector<256x256xf32> -> vector<256x256xf32>
    %cst_18 = arith.constant dense<0xFF800000> : vector<256xf32>
    %87 = vector.multi_reduction <maximumf>, %86, %cst_18 [1] : vector<256x256xf32> to vector<256xf32>
    %88 = vector.shape_cast %87 : vector<256xf32> to vector<256x1xf32>
    %89 = vector.broadcast %88 : vector<256x1xf32> to vector<256x256xf32>
    %90 = arith.subf %86, %89 : vector<256x256xf32>
    %91 = math.exp %90 : vector<256x256xf32>
    %92 = arith.truncf %85 : vector<5x256xf32> to vector<5x256xbf16>
    %93 = arith.truncf %91 : vector<256x256xf32> to vector<256x256xbf16>
    %cst_19 = arith.constant dense<0.000000e+00> : vector<5x256xf32>
    %94 = tpu.matmul %92, %93, %cst_19 {dimension_numbers = #tpu.dot_dimension_numbers<[1], [1], [0], [0], [0, 0, 1, 0], [], []>} : vector<5x256xbf16>, vector<256x256xbf16>, vector<5x256xf32> -> vector<5x256xf32>
    %95 = vector.extract_strided_slice %94 {offsets = [4, 0], sizes = [1, 256], strides = [1, 1]} : vector<5x256xf32> to vector<1x256xf32>
    %96 = tpu.reciprocal %95 {approx = true} : vector<1x256xf32> -> vector<1x256xf32>
    %97 = vector.extract_strided_slice %94 {offsets = [0, 0], sizes = [4, 256], strides = [1, 1]} : vector<5x256xf32> to vector<4x256xf32>
    %98 = vector.broadcast %96 : vector<1x256xf32> to vector<4x256xf32>
    %99 = arith.mulf %97, %98 : vector<4x256xf32>
    %100 = vector.broadcast %0 : f32 to vector<4x256xf32>
    %101 = arith.mulf %100, %99 : vector<4x256xf32>
    %102 = arith.addf %101, %10 : vector<4x256xf32>
    %c0_20 = arith.constant 0 : index
    %c0_21 = arith.constant 0 : index
    %c0_22 = arith.constant 0 : index
    %103 = vector.load %arg10[%c0_20, %c0_21, %c0_22] : memref<1x4x256xf32, #tpu.memory_space<vmem>>, vector<1x4x256xf32>
    %104 = vector.shape_cast %103 : vector<1x4x256xf32> to vector<4x256xf32>
    %105 = vector.shape_cast %102 : vector<4x256xf32> to vector<1x4x256xf32>
    tpu.vector_store %arg10[%c0_20, %c0_21, %c0_22], %105 {strides = array<i32>} : memref<1x4x256xf32, #tpu.memory_space<vmem>>, vector<1x4x256xf32>,
    return
  }
  func.func @transform_0(%arg0: i32) -> (i32, i32, i32) {
    %c0_i32 = arith.constant 0 : i32
    %c0_i32_0 = arith.constant 0 : i32
    %c0_i32_1 = arith.constant 0 : i32
    return %arg0, %c0_i32, %c0_i32_0 : i32, i32, i32
  }
  func.func @transform_1(%arg0: i32) -> (i32, i32, i32) {
    %c0_i32 = arith.constant 0 : i32
    %c0_i32_0 = arith.constant 0 : i32
    %c0_i32_1 = arith.constant 0 : i32
    return %arg0, %c0_i32, %c0_i32_0 : i32, i32, i32
  }
  func.func @transform_2(%arg0: i32) -> (i32, i32) {
    %c0_i32 = arith.constant 0 : i32
    %c0_i32_0 = arith.constant 0 : i32
    %c0_i32_1 = arith.constant 0 : i32
    return %c0_i32, %c0_i32_0 : i32, i32
  }
  func.func @transform_3(%arg0: i32) -> (i32, i32) {
    %c0_i32 = arith.constant 0 : i32
    %c0_i32_0 = arith.constant 0 : i32
    %c0_i32_1 = arith.constant 0 : i32
    return %c0_i32, %c0_i32_0 : i32, i32
  }
  func.func @transform_4(%arg0: i32) -> (i32, i32) {
    %c0_i32 = arith.constant 0 : i32
    %c0_i32_0 = arith.constant 0 : i32
    %c0_i32_1 = arith.constant 0 : i32
    return %c0_i32, %c0_i32_0 : i32, i32
  }
  func.func @transform_5(%arg0: i32) -> (i32, i32) {
    %c0_i32 = arith.constant 0 : i32
    %c0_i32_0 = arith.constant 0 : i32
    %c0_i32_1 = arith.constant 0 : i32
    return %c0_i32, %c0_i32_0 : i32, i32
  }
  func.func @transform_6(%arg0: i32) -> (i32, i32) {
    %c0_i32 = arith.constant 0 : i32
    %c0_i32_0 = arith.constant 0 : i32
    %c0_i32_1 = arith.constant 0 : i32
    return %c0_i32, %c0_i32_0 : i32, i32
  }
  func.func @transform_7(%arg0: i32) -> (i32, i32) {
    %c0_i32 = arith.constant 0 : i32
    %c0_i32_0 = arith.constant 0 : i32
    %c0_i32_1 = arith.constant 0 : i32
    return %c0_i32, %c0_i32_0 : i32, i32
  }
  func.func @transform_8(%arg0: i32) -> i32 {
    %c0_i32 = arith.constant 0 : i32
    %c0_i32_0 = arith.constant 0 : i32
    return %c0_i32 : i32
  }
  func.func @transform_9(%arg0: i32) -> (i32, i32, i32) {
    %c0_i32 = arith.constant 0 : i32
    %c0_i32_0 = arith.constant 0 : i32
    %c0_i32_1 = arith.constant 0 : i32
    return %arg0, %c0_i32, %c0_i32_0 : i32, i32, i32
  }
}

</mosaic_0001>

<bundles_post_ra>
// kernel: tpu_custom_call.1
= control target key start
LH: loop header
LB: loop body
LE: loop exit
PB: predicated region body
PF: predicated region fallthrough
CT: control target
= control target key end

     0   :  { %s2592_s0 = inlined_call_operand.vmem [shape: f32[2,4,256], index: 0, kind: input, shape index: {}]   ;;  %s2593_s1 = inlined_call_operand.hbm [shape: f32[2,4,256], index: 1, kind: input, shape index: {}]   ;;  %s2594_s2 = inlined_call_operand.vmem [shape: f32[2,4], index: 2, kind: input, shape index: {}]   ;;  %s2595_s3 = inlined_call_operand.vmem [shape: f32[2,4], index: 3, kind: input, shape index: {}]   ;;  %s2596_s4 = inlined_call_operand.vmem [shape: f32[5,4], index: 4, kind: input, shape index: {}]   ;;  %s2597_s5 = inlined_call_operand.vmem [shape: f32[2,1], index: 5, kind: input, shape index: {}]   ;;  %s2598_s6 = inlined_call_operand.vmem [shape: f32[2,1], index: 6, kind: input, shape index: {}]   ;;  %s2599_s7 = inlined_call_operand.vmem [shape: f32[5,1], index: 7, kind: input, shape index: {}]   ;;  %s2600_s8 = inlined_call_operand.<no memory space> [shape: f32[1], index: 8, kind: input, shape index: {}]   ;;  %s2601_s9 = inlined_call_operand.hbm [shape: f32[2,4,256], index: 9, kind: output, shape index: {}]  }
   0x1   :  { %14 = sst [smem:[#allocation2]] %s2600_s8 }
   0x2   :  { %15 = vsyncpa [#allocation4], 0 }
   0x3   :  { %17 = vsyncpa [#allocation4 + $0x1], 0 }
   0x4   :  { %18 = vsyncpa [#allocation5], 0 }
   0x5   :  { %20 = vsyncpa [#allocation5 + $0x1], 0  ;;  %s1874_s11 = smov 0   ;;  %s1876_s12 = smov 0  }
   0x6   :  { %s1878_s13 = smov 0   ;;  %s1880_s14 = smov 0  }
   0x7 LB: > { %2630 = sst [smem:[#allocation9_spill]] %s1811_s13  ;;  %s1895_s8 = sadd.s32 4294967295, %s1815_s14   ;;  %s1815_s14 = sphi %s1880_s14, %s2708_s14   ;;  %s1811_s13 = sphi %s1878_s13, %s2705_s13   ;;  %s1807_s12 = sphi %s1876_s12, %s2707_s12   ;;  %s1803_s11 = sphi %s1874_s11, %s2706_s11  }
   0x8   : > { %s1435_s15 = sadd.s32 4294967294, %s1815_s14   ;;  %s1899_s16 = sadd.s32 1, %s1815_s14  }
   0x9   : > { %s59_s17 = sadd.s32 1, %s1811_s13  ;;  %s56_s18 = ssub.s32 %s1815_s14, %s1899_s16 }
   0xa   : > { %p66_p0 = scmp.ne.s32.totalorder %s1811_s13, %s1807_s12  ;;  %p57_p1 = scmp.eq.s32.totalorder %s56_s18, 0 }
   0xb   : > { %p67_p2 = scmp.eq.s32.totalorder %s1815_s14, 0  ;;  %p72_p3 = scmp.ne.s32.totalorder %s1807_s12, %s1803_s11 }
   0xc   : > { %p73_p4 = scmp.eq.s32.totalorder %s1895_s8, 0  ;;  %p243_p7 = scmp.eq.s32.totalorder %s1895_s8, 1 }
   0xd   : > { %s1911_s19 = scalar_select %p57_p1, %s1811_s13, %s59_s17  }
   0xe   : > { %p1913_p5 = por %p67_p2, %p66_p0  ;;  %p1917_p6 = por %p73_p4, %p72_p3 }
   0xf   : > { %2631 = sst [smem:[#allocation10_spill]] %s1911_s19  ;;  %p249_p8 = scmp.eq.s32.totalorder %s1435_s15, 1 }
  0x10   : > { %p1534_p10 = scmp.lt.s32.totalorder %s1815_s14, 2  ;;  %p1924_p11 = por %p243_p7, %p66_p0 }
  0x11   : > { %p1928_p12 = por %p249_p8, %p72_p3  ;;  %s298_s24 = sand.u32 1, %s1811_s13  }
  0x12   : > { %s1517_s25 = sshll.u32 %s1815_s14, 3  ;;  %s1438_s26 = sshll.u32 %s298_s24, 3 }
  0x13   : > { %s307_s29 = scalar_lea.hbm %s2593_s1, %s1517_s25  ;;  %s302_s10 = scalar_lea.vmem [#allocation3], %s1438_s26 }
  0x14   : > { %s309_s30 = sshll.u32 %s307_s29, 4  ;;  %s311_s15 = sshll.u32 %s302_s10, 4  ;;  %s310_s30 = int_to_ptr.hbm [resolvable:$true] %s309_s30  ;;  %s312_s15 = int_to_ptr.vmem [resolvable:$true] %s311_s15 }
  0x15   : > { %p1939_p13 = pnand %p1534_p10, %p1913_p5  ;;  %p1441_p0 = scmp.ge.s32.totalorder %s1815_s14, 1 }
  0x16   : > { %p316_p1 = scmp.lt.s32.totalorder %s1815_s14, 3  ;;  %s299_s18 = scalar_lea.sflag [#allocation4], %s298_s24 }
  0x17   : > { %s1719_s19 = sshra.s32 %s310_s30, 4  ;;  %p1723_p3 = pneg %p1939_p13  ;;  %s1720_s19 = int_to_ptr.hbm [resolvable:$true] %s1719_s19 }
  0x18   : > { %s1721_s13 = scalar_lea.hbm %s1720_s19, 8  ;;  %s1726_s20 = scalar_lea.hbm %s2593_s1, 16 }
  0x19   : > { %p1722_p2 = scmp.ne.s32.totalorder %s1720_s19, %s1721_s13  ;;  %p1727_p5 = scmp.lt.s32.totalorder %s1720_s19, %s2593_s1 }
  0x1a   : > { %p1728_p8 = scmp.lt.s32.totalorder %s1726_s20, %s1721_s13 }
  0x1b   : > { %p1724_p4 = pnand %p1723_p3, %p1722_p2 }
  0x1c   : > { %p1729_p10 = por %p1728_p8, %p1727_p5 }
  0x1d   : > { %p1725_p7 = pneg %p1724_p4 }
  0x1f   : > { %p1730_p9 = pnand %p1729_p10, %p1725_p7 }
  0x21   : > { %1733 = shalt.err (!%p1730_p9)
}
  0x22   : > { %1529 = dma.hbm_to_vmem [thread:$0]  (!%p1939_p13), %s310_s30, 128, %s312_s15, %s299_s18  }
  0x23   : > { %p317_p2 = pnand %p1441_p0, %p316_p1 }
  0x25   : > { %320 = sbr.rel (%p317_p2) target bundleno = 1060 (0x424), region = 56 }
  0x2a   : > { %s1960_s24 = sand.u32 1, %s1807_s12  }
  0x2b   : > { %s1442_s13 = sshll.u32 %s1960_s24, 3  ;;  %s323_s19 = scalar_lea.sflag [#allocation4], %s1960_s24 }
  0x2c   : > { %s1966_s29 = scalar_lea.vmem [#allocation3], %s1442_s13 }
  0x2d   : > { %1794 = dma.done.wait (%p1917_p6), %s323_s19, 128  }
  0x2e   : > { %1796 = vsyncadd (%p1917_p6), %s323_s19, 4294967168  ;;  %v1817_v0 = vmov 2   ;;  %v2603_v1 = vmov 0   ;;  %v373_v2 = vld [vmem:[%s2594_s2] sm:$0x3]  ;;  %v2604_v4 = vmov 3  }
  0x2f   : > { %1575 = vset.pattern.permute.xlu1 %v1817_v0  ;;  %1573 = vset.pattern.permute.xlu0 %v2603_v1  ;;  %v376_v3 = vld [vmem:[%s2597_s5] sm:$0x3]  ;;  %v1820_v5 = vmov 1   ;;  %v380_v8 = vld [vmem:[%s1966_s29] sm:$0xff]  ;;  %p367_p6 = scmp.lt.s32.totalorder %s1895_s8, 1  ;;  %vm706_vm0 = vcmask 1041408  }
  0x30   : > { %1577 = vset.pattern.permute.xlu2 %v2603_v1  ;;  %410 = vperm.xlu1 %1575, %v373_v2   ;;  %v374_v6 = vld [vmem:[%s2595_s3] sm:$0x3]  ;;  %1322 = vst [vmem:[#allocation1] ss:$2 sm:$0xff] %v380_v8  ;;  %v450_v32 = vperm.slane %v380_v8, 0  ;;  %v451_v33 = vperm.slane %v380_v8, 4 }
  0x31   : > { %383 = vperm.xlu0 %1573, %v373_v2   ;;  %439 = vperm.xlu2 %1577, %v376_v3   ;;  %v377_v7 = vld [vmem:[%s2598_s6] sm:$0x3]  ;;  %s368_s20 = scalar_select %p367_p6, %s1895_s8, 1  ;;  %v462_v34 = vperm.slane %v380_v8, 1  ;;  %v463_v35 = vperm.slane %v380_v8, 5  ;;  %v476_v42 = vperm.slane %v380_v8, 2 }
  0x32   : > { %v477_v43 = vperm.slane %v380_v8, 6  ;;  %v1997_v48 = vperm.slane %v450_v32, 0  ;;  %v1999_v49 = vperm.slane %v451_v33, 0  ;;  %v490_v50 = vperm.slane %v380_v8, 3  ;;  %s372_s21 = sld [smem:[#allocation2]]  ;;  %s1519_s18 = sshll.u32 %s1895_s8, 3 }
  0x33   : > { %s1518_s27 = sshll.u32 %s368_s20, 3  ;;  %v491_v51 = vperm.slane %v380_v8, 7  ;;  %v2001_v54 = vperm.slane %v462_v34, 1  ;;  %v2003_v55 = vperm.slane %v463_v35, 1  ;;  %v2005_v56 = vperm.slane %v476_v42, 2  ;;  %s1348_s20 = scalar_lea.hbm %s2601_s9, %s1519_s18 }
  0x34   : > { %s371_s30 = scalar_lea.vmem %s2592_s0, %s1518_s27  ;;  %2637 = vst [vmem:[#allocation11_spill] sm:$0xff] %v1997_v48  ;;  %v2007_v57 = vperm.slane %v477_v43, 2  ;;  %v2011_v63 = vperm.slane %v490_v50, 3  ;;  %vm609_vm1 = vcmask 15360   ;;  %s366_s27 = scalar_lea.vmem [#allocation6], %s1442_s13  ;;  %vm1332_vm2 = vcmask 1043456  }
  0x35   : > { %v379_v10 = vld [vmem:[%s371_s30] sm:$0xff]  ;;  %2638 = vst [vmem:[#allocation12_spill] sm:$0xff] %v1999_v49  ;;  %s1350_s28 = sshll.u32 %s366_s27, 4  ;;  %s1352_s19 = sshll.u32 %s1348_s20, 4  ;;  %s1351_s28 = int_to_ptr.vmem [resolvable:$true] %s1350_s28  ;;  %s1353_s19 = int_to_ptr.hbm [resolvable:$true] %s1352_s19 }
  0x36   : > { %v387_v13 = vperm.slane %v379_v10, 0  ;;  %v388_v14 = vperm.slane %v379_v10, 4  ;;  %v399_v15 = vperm.slane %v379_v10, 1  ;;  %v400_v16 = vperm.slane %v379_v10, 5  ;;  %2639 = vst [vmem:[#allocation13_spill] sm:$0xff] %v2001_v54  ;;  %s1337_s8 = scalar_lea.sflag [#allocation5], %s1960_s24 }
  0x37   : > { %v413_v17 = vperm.slane %v379_v10, 2  ;;  %v414_v18 = vperm.slane %v379_v10, 6  ;;  %v427_v19 = vperm.slane %v379_v10, 3  ;;  %v428_v20 = vperm.slane %v379_v10, 7  ;;  %2640 = vst [vmem:[#allocation14_spill] sm:$0xff] %v2003_v55  ;;  %s1763_s30 = sshra.s32 %s1353_s19, 4  ;;  %s1764_s30 = int_to_ptr.hbm [resolvable:$true] %s1763_s30 }
  0x38   : > { %1576 = vset.pattern.permute.xlu1 %v2604_v4  ;;  %v391_v21 = vperm.slane %v387_v13, 0  ;;  %v392_v22 = vperm.slane %v388_v14, 0  ;;  %v403_v23 = vperm.slane %v399_v15, 1  ;;  %v404_v24 = vperm.slane %v400_v16, 1  ;;  %2641 = vst [vmem:[#allocation15_spill] sm:$0xff] %v2005_v56  ;;  %s1765_s29 = scalar_lea.hbm %s1764_s30, 8  ;;  %p1770_p1 = scmp.lt.s32.totalorder %s1764_s30, %s2601_s9 }
  0x39   : > { %1574 = vset.pattern.permute.xlu0 %v1820_v5  ;;  %424 = vperm.xlu1 %1576, %v373_v2   ;;  %v417_v26 = vperm.slane %v413_v17, 2  ;;  %v418_v27 = vperm.slane %v414_v18, 2  ;;  %v431_v28 = vperm.slane %v427_v19, 3  ;;  %v432_v29 = vperm.slane %v428_v20, 3  ;;  %2642 = vst [vmem:[#allocation16_spill] sm:$0xff] %v2007_v57  ;;  %p1766_p9 = scmp.ne.s32.totalorder %s1764_s30, %s1765_s29  ;;  %s1769_s13 = scalar_lea.hbm %s2601_s9, 16 }
  0x3a   : > { %396 = vperm.xlu0 %1574, %v373_v2   ;;  %446 = vperm.xlu2 %1577, %v374_v6   ;;  %2643 = vst [vmem:[#allocation17_spill] sm:$0xff] %v2011_v63  ;;  %v2013_v2 = vperm.slane %v491_v51, 3  ;;  %p1771_p3 = scmp.lt.s32.totalorder %s1769_s13, %s1765_s29 }
  0x3b   : > { %p1767_p13 = pnand %p1766_p9, %p1924_p11 }
  0x3c   : > { %2644 = vst [vmem:[#allocation18_spill] sm:$0xff] %v2013_v2  ;;  %p1772_p4 = por %p1771_p3, %p1770_p1 }
  0x3d   : > { %p1768_p0 = pneg %p1767_p13 }
  0x3f   : > { %p1773_p7 = pnand %p1772_p4, %p1768_p0 }
  0x41   : > { %1578 = vset.pattern.permute.xlu1 %v1820_v5 }
  0x42   : > { %1580 = vset.pattern.permute.xlu0 %v2604_v4  ;;  %459 = vperm.xlu1 %1578, %v374_v6  }
  0x43   : > { %487 = vperm.xlu0 %1580, %v374_v6   ;;  %1579 = vset.pattern.permute.xlu2 %v1817_v0 }
  0x44   : > { %473 = vperm.xlu2 %1579, %v374_v6  }
  0x4a   : > { %1581 = vset.pattern.permute.xlu1 %v2603_v1 }
  0x4b   : > { %1583 = vset.pattern.permute.xlu0 %v1820_v5  ;;  %502 = vperm.xlu1 %1581, %v377_v7  }
  0x8b   : > { %v440_v9 = vpop.permute.xlu2 %439 }
  0x94   : > { %v447_v25 = vpop.permute.xlu2 %446 }
  0x95   : > { %v456_v61 = vmul.f32 %v1997_v48, %v447_v25  ;;  %v457_v62 = vmul.f32 %v1999_v49, %v447_v25 }
  0x9e   : > { %v474_v60 = vpop.permute.xlu2 %473 }
  0xa2   : > { %v411_v12 = vpop.permute.xlu1 %410 }
  0xa3   : > { %v384_v11 = vpop.permute.xlu0 %383  ;;  %v419_v40 = vmul.f32 %v417_v26, %v411_v12  ;;  %v420_v41 = vmul.f32 %v418_v27, %v411_v12  ;;  %v483_v12 = vmul.f32 %v2007_v57, %v474_v60 }
  0xa4   : > { %v393_v36 = vmul.f32 %v391_v21, %v384_v11  ;;  %v394_v37 = vmul.f32 %v392_v22, %v384_v11  ;;  %v482_v11 = vmul.f32 %v2005_v56, %v474_v60 }
  0xab   : > { %v425_v31 = vpop.permute.xlu1 %424 }
  0xac   : > { %v397_v30 = vpop.permute.xlu0 %396  ;;  %v433_v46 = vmul.f32 %v431_v28, %v425_v31  ;;  %v434_v47 = vmul.f32 %v432_v29, %v425_v31 }
  0xad   : > { %v405_v38 = vmul.f32 %v403_v23, %v397_v30  ;;  %v406_v39 = vmul.f32 %v404_v24, %v397_v30 }
  0xaf   : > { %v407_v44 = vadd.f32 %v405_v38, %v393_v36  ;;  %v408_v45 = vadd.f32 %v406_v39, %v394_v37 }
  0xb1   : > { %v421_v52 = vadd.f32 %v419_v40, %v407_v44  ;;  %v422_v53 = vadd.f32 %v420_v41, %v408_v45 }
  0xb3   : > { %v435_v58 = vadd.f32 %v433_v46, %v421_v52  ;;  %v436_v59 = vadd.f32 %v434_v47, %v422_v53 }
  0xb4   : > { %v460_v3 = vpop.permute.xlu1 %459 }
  0xb5   : > { %v443_v5 = vadd.f32 %v440_v9, %v436_v59  ;;  %v442_v6 = vadd.f32 %v440_v9, %v435_v58  ;;  %v488_v7 = vpop.permute.xlu0 %487  ;;  %v468_v8 = vmul.f32 %v2001_v54, %v460_v3  ;;  %v469_v10 = vmul.f32 %v2003_v55, %v460_v3 }
  0xb6   : > { %v496_v15 = vmul.f32 %v2011_v63, %v488_v7  ;;  %v497_v16 = vmul.f32 %v2013_v2, %v488_v7 }
  0xb7   : > { %577 = vxpose.xlu1.b32.start.end [1/1] (short) %v443_v5, 128  ;;  %545 = vxpose.xlu2.b32.start.end [1/1] (short) %v442_v6, 128  ;;  %v470_v13 = vadd.f32 %v468_v8, %v456_v61  ;;  %v471_v14 = vadd.f32 %v469_v10, %v457_v62 }
  0xb9   : > { %v484_v17 = vadd.f32 %v482_v11, %v470_v13  ;;  %v485_v18 = vadd.f32 %v483_v12, %v471_v14 }
  0xbb   : > { %v498_v9 = vadd.f32 %v496_v15, %v484_v17  ;;  %v499_v19 = vadd.f32 %v497_v16, %v485_v18 }
  0xbd   : > { %v503_v20 = vpop.permute.xlu1 %502 }
  0xbe   : > { %v505_v21 = vadd.f32 %v503_v20, %v498_v9  ;;  %v506_v22 = vadd.f32 %v503_v20, %v499_v19 }
  0xc0   : > { %1446 = vmatpush.msk.msra.mxu0 %vm706_vm0, %v505_v21  ;;  %1520 = vmatpush.msk.msra.mxu2 %vm706_vm0, %v505_v21 }
  0xc1   : > { %1479 = vmatpush.msk.msra.mxu1 %vm706_vm0, %v506_v22  ;;  %1521 = vmatpush.msk.msra.mxu3 %vm706_vm0, %v506_v22 }
 0x10a   : > { %1584 = vset.pattern.permute.xlu1 %v1817_v0 }
 0x119   : > { %1582 = vset.pattern.permute.xlu2 %v2603_v1 }
 0x150   : > { %v561_v23 = vpop.trf.xlu2 }
 0x151   : > { %1447 = vmatmul.msk.f32.vlgmr.msra.gmra.mxu0 %vm609_vm1, %v561_v23  ;;  %1480 = vmatmul.msk.f32.vlgmr.msra.gmra.mxu1 %vm609_vm1, %v561_v23 }
 0x158   : > { %v562_v24 = vpop.trf.xlu2 }
 0x159   : > { %1448 = vmatmul.msk.f32.gmra.mxu0 %vm609_vm1, %v562_v24  ;;  %1481 = vmatmul.msk.f32.gmra.mxu1 %vm609_vm1, %v562_v24 }
 0x15b   : > { %v2027_v25 = vpop.trf.xlu1 }
 0x160   : > { %v563_v26 = vpop.trf.xlu2 }
 0x161   : > { %1449 = vmatmul.msk.f32.gmra.mxu0 %vm609_vm1, %v563_v26  ;;  %1482 = vmatmul.msk.f32.gmra.mxu1 %vm609_vm1, %v563_v26 }
 0x163   : > { %v2031_v0 = vpop.trf.xlu1 }
 0x168   : > { %v564_v27 = vpop.trf.xlu2 }
 0x169   : > { %1450 = vmatmul.msk.f32.gmra.mxu0 %vm609_vm1, %v564_v27  ;;  %1483 = vmatmul.msk.f32.gmra.mxu1 %vm609_vm1, %v564_v27 }
 0x16b   : > { %v2035_v28 = vpop.trf.xlu1 }
 0x170   : > { %v565_v29 = vpop.trf.xlu2 }
 0x171   : > { %1451 = vmatmul.msk.f32.gmra.mxu0 %vm609_vm1, %v565_v29  ;;  %1484 = vmatmul.msk.f32.gmra.mxu1 %vm609_vm1, %v565_v29 }
 0x173   : > { %v2039_v30 = vpop.trf.xlu1 }
 0x178   : > { %v566_v31 = vpop.trf.xlu2 }
 0x179   : > { %1452 = vmatmul.msk.f32.gmra.mxu0 %vm609_vm1, %v566_v31  ;;  %1485 = vmatmul.msk.f32.gmra.mxu1 %vm609_vm1, %v566_v31 }
 0x17b   : > { %v2043_v32 = vpop.trf.xlu1 }
 0x180   : > { %v567_v33 = vpop.trf.xlu2 }
 0x181   : > { %1453 = vmatmul.msk.f32.gmra.mxu0 %vm609_vm1, %v567_v33  ;;  %1486 = vmatmul.msk.f32.gmra.mxu1 %vm609_vm1, %v567_v33 }
 0x183   : > { %v2047_v34 = vpop.trf.xlu1 }
 0x184   : > { %1501 = vmatmul.msk.f32.vlgmr.msra.gmra.mxu3 %vm609_vm1, %v2047_v34 }
 0x188   : > { %v568_v35 = vpop.trf.xlu2 }
 0x189   : > { %1454 = vmatmul.msk.f32.gmra.mxu0 %vm609_vm1, %v568_v35  ;;  %1487 = vmatmul.msk.f32.gmra.mxu1 %vm609_vm1, %v568_v35 }
 0x18b   : > { %v2053_v36 = vpop.trf.xlu1 }
 0x18c   : > { %1502 = vmatmul.msk.f32.gmra.mxu3 %vm609_vm1, %v2053_v36 }
 0x190   : > { %v569_v37 = vpop.trf.xlu2 }
 0x191   : > { %1455 = vmatmul.msk.f32.gmra.mxu0 %vm609_vm1, %v569_v37  ;;  %1488 = vmatmul.msk.f32.gmra.mxu1 %vm609_vm1, %v569_v37 }
 0x193   : > { %v600_v38 = vpop.trf.xlu1 }
 0x194   : > { %1470 = vmatmul.msk.f32.vlgmr.msra.gmra.mxu2 %vm609_vm1, %v600_v38  ;;  %1503 = vmatmul.msk.f32.gmra.mxu3 %vm609_vm1, %v600_v38 }
 0x198   : > { %v570_v39 = vpop.trf.xlu2 }
 0x199   : > { %1456 = vmatmul.msk.f32.gmra.mxu0 %vm609_vm1, %v570_v39  ;;  %1489 = vmatmul.msk.f32.gmra.mxu1 %vm609_vm1, %v570_v39 }
 0x19b   : > { %v601_v40 = vpop.trf.xlu1 }
 0x19c   : > { %1471 = vmatmul.msk.f32.gmra.mxu2 %vm609_vm1, %v601_v40  ;;  %1504 = vmatmul.msk.f32.gmra.mxu3 %vm609_vm1, %v601_v40 }
 0x1a0   : > { %v571_v41 = vpop.trf.xlu2 }
 0x1a1   : > { %1457 = vmatmul.msk.f32.gmra.mxu0 %vm609_vm1, %v571_v41  ;;  %1490 = vmatmul.msk.f32.gmra.mxu1 %vm609_vm1, %v571_v41 }
 0x1a3   : > { %v602_v42 = vpop.trf.xlu1 }
 0x1a4   : > { %1472 = vmatmul.msk.f32.gmra.mxu2 %vm609_vm1, %v602_v42  ;;  %1505 = vmatmul.msk.f32.gmra.mxu3 %vm609_vm1, %v602_v42 }
 0x1a8   : > { %v572_v43 = vpop.trf.xlu2 }
 0x1a9   : > { %1458 = vmatmul.msk.f32.gmra.mxu0 %vm609_vm1, %v572_v43  ;;  %1491 = vmatmul.msk.f32.gmra.mxu1 %vm609_vm1, %v572_v43 }
 0x1ab   : > { %v603_v44 = vpop.trf.xlu1 }
 0x1ac   : > { %1473 = vmatmul.msk.f32.gmra.mxu2 %vm609_vm1, %v603_v44  ;;  %1506 = vmatmul.msk.f32.gmra.mxu3 %vm609_vm1, %v603_v44 }
 0x1b0   : > { %v573_v45 = vpop.trf.xlu2 }
 0x1b1   : > { %1459 = vmatmul.msk.f32.gmra.mxu0 %vm609_vm1, %v573_v45  ;;  %1492 = vmatmul.msk.f32.gmra.mxu1 %vm609_vm1, %v573_v45 }
 0x1b3   : > { %v604_v46 = vpop.trf.xlu1 }
 0x1b4   : > { %1474 = vmatmul.msk.f32.gmra.mxu2 %vm609_vm1, %v604_v46  ;;  %1507 = vmatmul.msk.f32.gmra.mxu3 %vm609_vm1, %v604_v46 }
 0x1b8   : > { %v574_v47 = vpop.trf.xlu2 }
 0x1b9   : > { %1460 = vmatmul.msk.f32.gmra.mxu0 %vm609_vm1, %v574_v47  ;;  %1493 = vmatmul.msk.f32.gmra.mxu1 %vm609_vm1, %v574_v47 }
 0x1bb   : > { %v605_v51 = vpop.trf.xlu1 }
 0x1bc   : > { %1475 = vmatmul.msk.f32.gmra.mxu2 %vm609_vm1, %v605_v51  ;;  %1508 = vmatmul.msk.f32.gmra.mxu3 %vm609_vm1, %v605_v51 }
 0x1c0   : > { %v575_v50 = vpop.trf.xlu2 }
 0x1c1   : > { %1461 = vmatmul.msk.f32.gmra.mxu0 %vm609_vm1, %v575_v50  ;;  %1494 = vmatmul.msk.f32.gmra.mxu1 %vm609_vm1, %v575_v50 }
 0x1c3   : > { %v606_v53 = vpop.trf.xlu1 }
 0x1c4   : > { %1476 = vmatmul.msk.f32.gmra.mxu2 %vm609_vm1, %v606_v53  ;;  %1509 = vmatmul.msk.f32.gmra.mxu3 %vm609_vm1, %v606_v53 }
 0x1c8   : > { %v576_v52 = vpop.trf.xlu2 }
 0x1c9   : > { %1462 = vmatmul.msk.f32.gmra.mxu0 %vm609_vm1, %v576_v52  ;;  %1495 = vmatmul.msk.f32.gmra.mxu1 %vm609_vm1, %v576_v52 }
 0x1cb   : > { %v607_v5 = vpop.trf.xlu1 }
 0x1cc   : > { %1477 = vmatmul.msk.f32.gmra.mxu2 %vm609_vm1, %v607_v5  ;;  %1510 = vmatmul.msk.f32.gmra.mxu3 %vm609_vm1, %v607_v5 }
 0x1ce   : > { %v2087_v58 = vpop.f32.mrf.mxu0  ;;  %v2089_v59 = vpop.f32.mrf.mxu1 }
 0x1cf   : > { %v939_v60 = vmax.f32 %v2087_v58, %v2089_v59 }
 0x1d1   : > { %1463 = vmatmul.msk.f32.gmra.mxu0 %vm609_vm1, %v2027_v25  ;;  %1496 = vmatmul.msk.f32.gmra.mxu1 %vm609_vm1, %v2027_v25 }
 0x1d2   : > { %940 = vmax.xlane.f32.xlu0 %v939_v60 }
 0x1d6   : > { %v2097_v61 = vpop.f32.mrf.mxu0  ;;  %v2099_v62 = vpop.f32.mrf.mxu1 }
 0x1d7   : > { %v942_v3 = vmax.f32 %v2097_v61, %v2099_v62 }
 0x1d9   : > { %1464 = vmatmul.msk.f32.gmra.mxu0 %vm609_vm1, %v2031_v0  ;;  %1497 = vmatmul.msk.f32.gmra.mxu1 %vm609_vm1, %v2031_v0 }
 0x1da   : > { %943 = vmax.xlane.f32.xlu0 %v942_v3 }
 0x1de   : > { %v2109_v6 = vpop.f32.mrf.mxu0  ;;  %v2111_v7 = vpop.f32.mrf.mxu1 }
 0x1df   : > { %v945_v8 = vmax.f32 %v2109_v6, %v2111_v7 }
 0x1e1   : > { %1465 = vmatmul.msk.f32.gmra.mxu0 %vm609_vm1, %v2035_v28  ;;  %1498 = vmatmul.msk.f32.gmra.mxu1 %vm609_vm1, %v2035_v28 }
 0x1e2   : > { %946 = vmax.xlane.f32.xlu0 %v945_v8 }
 0x1e6   : > { %v2119_v10 = vpop.f32.mrf.mxu0  ;;  %v2121_v11 = vpop.f32.mrf.mxu1 }
 0x1e7   : > { %v948_v12 = vmax.f32 %v2119_v10, %v2121_v11 }
 0x1e9   : > { %1466 = vmatmul.msk.f32.gmra.mxu0 %vm609_vm1, %v2039_v30  ;;  %1499 = vmatmul.msk.f32.gmra.mxu1 %vm609_vm1, %v2039_v30 }
 0x1ea   : > { %949 = vmax.xlane.f32.xlu0 %v948_v12 }
 0x1ee   : > { %v2129_v13 = vpop.f32.mrf.mxu0  ;;  %v2131_v14 = vpop.f32.mrf.mxu1 }
 0x1ef   : > { %v951_v15 = vmax.f32 %v2129_v13, %v2131_v14 }
 0x1f1   : > { %1467 = vmatmul.msk.f32.gmra.mxu0 %vm609_vm1, %v2043_v32  ;;  %1500 = vmatmul.msk.f32.gmra.mxu1 %vm609_vm1, %v2043_v32  ;;  %v608_v32 = vpop.trf.xlu1 }
 0x1f2   : > { %952 = vmax.xlane.f32.xlu0 %v951_v15  ;;  %1478 = vmatmul.msk.f32.gmra.mxu2 %vm609_vm1, %v608_v32 }
 0x1f3   : > { %1511 = vmatmul.msk.f32.gmra.mxu3 %vm609_vm1, %v608_v32 }
 0x1f6   : > { %v2139_v16 = vpop.f32.mrf.mxu0  ;;  %v2141_v17 = vpop.f32.mrf.mxu1 }
 0x1f7   : > { %v954_v18 = vmax.f32 %v2139_v16, %v2141_v17 }
 0x1f9   : > { %1468 = vmatmul.msk.f32.gmra.mxu0 %vm609_vm1, %v2047_v34 }
 0x1fa   : > { %955 = vmax.xlane.f32.xlu0 %v954_v18 }
 0x1fe   : > { %v2147_v9 = vpop.f32.mrf.mxu0  ;;  %v2149_v19 = vpop.f32.mrf.mxu1 }
 0x1ff   : > { %v957_v20 = vmax.f32 %v2147_v9, %v2149_v19 }
 0x201   : > { %1469 = vmatmul.msk.f32.gmra.mxu0 %vm609_vm1, %v2053_v36 }
 0x202   : > { %958 = vmax.xlane.f32.xlu0 %v957_v20 }
 0x206   : > { %v2155_v21 = vpop.f32.mrf.mxu0  ;;  %v2157_v22 = vpop.f32.mrf.mxu1 }
 0x207   : > { %v2159_v23 = vpop.f32.mrf.mxu3  ;;  %v960_v24 = vmax.f32 %v2155_v21, %v2157_v22 }
 0x208   : > { %2645 = vst [vmem:[#allocation19_spill] sm:$0xff] %v2159_v23 }
 0x20a   : > { %961 = vmax.xlane.f32.xlu0 %v960_v24 }
 0x20e   : > { %v2163_v25 = vpop.f32.mrf.mxu0  ;;  %v2165_v26 = vpop.f32.mrf.mxu1 }
 0x20f   : > { %v2167_v0 = vpop.f32.mrf.mxu3  ;;  %v963_v35 = vmax.f32 %v2163_v25, %v2165_v26 }
 0x216   : > { %v2169_v27 = vpop.f32.mrf.mxu0  ;;  %v2171_v28 = vpop.f32.mrf.mxu1 }
 0x217   : > { %v2173_v29 = vpop.f32.mrf.mxu2  ;;  %v2175_v30 = vpop.f32.mrf.mxu3  ;;  %v966_v43 = vmax.f32 %v2169_v27, %v2171_v28 }
 0x218   : > { %2646 = vst [vmem:[#allocation20_spill] sm:$0xff] %v2173_v29  ;;  %v1008_v31 = vmax.f32 %v2173_v29, %v2175_v30 }
 0x219   : > { %2647 = vst [vmem:[#allocation21_spill] sm:$0xff] %v2175_v30 }
 0x21a   : > { %1009 = vmax.xlane.f32.xlu0 %v1008_v31 }
 0x21e   : > { %v2181_v33 = vpop.f32.mrf.mxu0  ;;  %v2183_v34 = vpop.f32.mrf.mxu1 }
 0x21f   : > { %v2187_v36 = vpop.f32.mrf.mxu2  ;;  %v2189_v37 = vpop.f32.mrf.mxu3  ;;  %v969_v60 = vmax.f32 %v2181_v33, %v2183_v34 }
 0x220   : > { %v1011_v40 = vmax.f32 %v2187_v36, %v2189_v37 }
 0x222   : > { %964 = vmax.xlane.f32.xlu0 %v963_v35 }
 0x226   : > { %v2191_v38 = vpop.f32.mrf.mxu0  ;;  %v2193_v39 = vpop.f32.mrf.mxu1 }
 0x227   : > { %v2203_v44 = vpop.f32.mrf.mxu2  ;;  %v2205_v45 = vpop.f32.mrf.mxu3 }
 0x228   : > { %v1014_v50 = vmax.f32 %v2203_v44, %v2205_v45 }
 0x22a   : > { %1012 = vmax.xlane.f32.xlu0 %v1011_v40 }
 0x22e   : > { %v2197_v41 = vpop.f32.mrf.mxu0  ;;  %v2199_v42 = vpop.f32.mrf.mxu1 }
 0x22f   : > { %v2221_v3 = vpop.f32.mrf.mxu2  ;;  %v2223_v5 = vpop.f32.mrf.mxu3 }
 0x230   : > { %v1017_v18 = vmax.f32 %v2221_v3, %v2223_v5 }
 0x232   : > { %967 = vmax.xlane.f32.xlu0 %v966_v43 }
 0x236   : > { %v2207_v46 = vpop.f32.mrf.mxu0  ;;  %v2209_v47 = vpop.f32.mrf.mxu1 }
 0x237   : > { %v978_v51 = vmax.f32 %v2207_v46, %v2209_v47 }
 0x239   : > { %979 = vmax.xlane.f32.xlu1 %v978_v51  ;;  %v972_v51 = vmax.f32 %v2191_v38, %v2193_v39 }
 0x23a   : > { %1015 = vmax.xlane.f32.xlu0 %v1014_v50 }
 0x23e   : > { %v2215_v52 = vpop.f32.mrf.mxu0  ;;  %v2217_v53 = vpop.f32.mrf.mxu1 }
 0x242   : > { %970 = vmax.xlane.f32.xlu0 %v969_v60  ;;  %v2242_v60 = vld [vmem:[%s2596_s4] sm:$0x1f] }
 0x245   : > { %v941_v8 = vpop.xlane.xlu0 %940 }
 0x246   : > { %v2225_v12 = vpop.f32.mrf.mxu0  ;;  %v2227_v15 = vpop.f32.mrf.mxu1  ;;  %v1035_v24 = vsub.f32 %v2087_v58, %v941_v8  ;;  %v1036_v31 = vsub.f32 %v2089_v59, %v941_v8 }
 0x247   : > { %v984_v20 = vmax.f32 %v2225_v12, %v2227_v15 }
 0x248   : > { %v1099_v32 = vmul.f32 1.442695, %v1035_v24  ;;  %v1101_v35 = vmul.f32 1.442695, %v1036_v31 }
 0x249   : > { %985 = vmax.xlane.f32.xlu2 %v984_v20 }
 0x24a   : > { %1018 = vmax.xlane.f32.xlu0 %v1017_v18  ;;  %1587 = vpow2.f32 %v1099_v32 }
 0x24b   : > { %1589 = vpow2.f32 %v1101_v35 }
 0x24d   : > { %v944_v40 = vpop.xlane.xlu0 %943 }
 0x24e   : > { %v1037_v43 = vsub.f32 %v2097_v61, %v944_v40  ;;  %v1038_v50 = vsub.f32 %v2099_v62, %v944_v40  ;;  %v2245_v61 = vpop.f32.mrf.mxu2  ;;  %v2247_v62 = vpop.f32.mrf.mxu3 }
 0x24f   : > { %v1020_v20 = vmax.f32 %v2245_v61, %v2247_v62 }
 0x250   : > { %v1103_v58 = vmul.f32 1.442695, %v1037_v43  ;;  %v1105_v59 = vmul.f32 1.442695, %v1038_v50  ;;  %v2249_v18 = vpop.eup %1587 }
 0x251   : > { %v2253_v24 = vpop.eup %1589 }
 0x252   : > { %1591 = vpow2.f32 %v1103_v58  ;;  %973 = vmax.xlane.f32.xlu0 %v972_v51  ;;  %523 = vperm.xlu1 %1584, %v2242_v60  }
 0x253   : > { %1593 = vpow2.f32 %v1105_v59 }
 0x255   : > { %v947_v8 = vpop.xlane.xlu0 %946 }
 0x256   : > { %v1039_v32 = vsub.f32 %v2109_v6, %v947_v8  ;;  %v1040_v40 = vsub.f32 %v2111_v7, %v947_v8  ;;  %v975_v6 = vmax.f32 %v2197_v41, %v2199_v42  ;;  %v2270_v8 = vpop.f32.mrf.mxu2 }
 0x258   : > { %v2255_v31 = vpop.eup %1591  ;;  %v1107_v51 = vmul.f32 1.442695, %v1039_v32  ;;  %v1109_v58 = vmul.f32 1.442695, %v1040_v40 }
 0x259   : > { %v2258_v35 = vpop.eup %1593 }
 0x25a   : > { %1021 = vmax.xlane.f32.xlu0 %v1020_v20  ;;  %1595 = vpow2.f32 %v1107_v51  ;;  %v2272_v20 = vpop.f32.mrf.mxu3 }
 0x25b   : > { %1597 = vpow2.f32 %v1109_v58 }
 0x25d   : > { %v950_v59 = vpop.xlane.xlu0 %949 }
 0x25e   : > { %v1041_v1 = vsub.f32 %v2119_v10, %v950_v59  ;;  %v1042_v4 = vsub.f32 %v2121_v11, %v950_v59  ;;  %v1023_v11 = vmax.f32 %v2270_v8, %v2272_v20  ;;  %v2648_v59 = vmov 3  }
 0x260   : > { %v1111_v2 = vmul.f32 1.442695, %v1041_v1  ;;  %v1113_v7 = vmul.f32 1.442695, %v1042_v4  ;;  %v2274_v10 = vpop.eup %1595 }
 0x261   : > { %509 = vperm.xlu2 %1582, %v2242_v60   ;;  %v2278_v40 = vpop.eup %1597 }
 0x262   : > { %1599 = vpow2.f32 %v1111_v2  ;;  %976 = vmax.xlane.f32.xlu0 %v975_v6  ;;  %v2294_v50 = vpop.f32.mrf.mxu3 }
 0x263   : > { %1601 = vpow2.f32 %v1113_v7  ;;  %v2292_v7 = vpop.f32.mrf.mxu2 }
 0x265   : > { %v953_v32 = vpop.xlane.xlu0 %952 }
 0x266   : > { %v1043_v4 = vsub.f32 %v2129_v13, %v953_v32  ;;  %v1044_v58 = vsub.f32 %v2131_v14, %v953_v32 }
 0x268   : > { %v2280_v1 = vpop.eup %1599  ;;  %v1115_v13 = vmul.f32 1.442695, %v1043_v4  ;;  %v1117_v43 = vmul.f32 1.442695, %v1044_v58  ;;  %v981_v4 = vmax.f32 %v2215_v52, %v2217_v53 }
 0x269   : > { %v2283_v51 = vpop.eup %1601  ;;  %1585 = vset.pattern.permute.xlu2 %v2648_v59  ;;  %v1026_v59 = vmax.f32 %v2292_v7, %v2294_v50 }
 0x26a   : > { %1024 = vmax.xlane.f32.xlu0 %v1023_v11  ;;  %531 = vperm.xlu2 %1585, %v2242_v60   ;;  %1603 = vpow2.f32 %v1115_v13  ;;  %v2324_v56 = vpop.f32.mrf.mxu3 }
 0x26b   : > { %1605 = vpow2.f32 %v1117_v43 }
 0x26d   : > { %v956_v63 = vpop.xlane.xlu0 %955 }
 0x26e   : > { %v1045_v14 = vsub.f32 %v2139_v16, %v956_v63  ;;  %v1046_v32 = vsub.f32 %v2141_v17, %v956_v63  ;;  %v2306_v16 = vpop.f32.mrf.mxu0  ;;  %v2308_v63 = vpop.f32.mrf.mxu1 }
 0x26f   : > { %2649 = vst [vmem:[#allocation22_spill] sm:$0xff] %v2306_v16 }
 0x270   : > { %v1119_v11 = vmul.f32 1.442695, %v1045_v14  ;;  %v1121_v2 = vmul.f32 1.442695, %v1046_v32  ;;  %v2300_v57 = vpop.eup %1603  ;;  %2650 = vst [vmem:[#allocation23_spill] sm:$0xff] %v2308_v63  ;;  %v987_v32 = vmax.f32 %v2306_v16, %v2308_v63 }
 0x271   : > { %v2304_v58 = vpop.eup %1605 }
 0x272   : > { %1607 = vpow2.f32 %v1119_v11  ;;  %1027 = vmax.xlane.f32.xlu0 %v1026_v59  ;;  %v2322_v11 = vpop.f32.mrf.mxu2 }
 0x273   : > { %1609 = vpow2.f32 %v1121_v2 }
 0x275   : > { %v959_v6 = vpop.xlane.xlu0 %958 }
 0x276   : > { %v1047_v13 = vsub.f32 %v2147_v9, %v959_v6  ;;  %v1048_v2 = vsub.f32 %v2149_v19, %v959_v6 }
 0x278   : > { %v2310_v17 = vpop.eup %1607  ;;  %v1123_v55 = vmul.f32 1.442695, %v1047_v13  ;;  %v1125_v9 = vmul.f32 1.442695, %v1048_v2 }
 0x279   : > { %v2313_v43 = vpop.eup %1609 }
 0x27a   : > { %982 = vmax.xlane.f32.xlu0 %v981_v4  ;;  %v1029_v4 = vmax.f32 %v2322_v11, %v2324_v56  ;;  %1611 = vpow2.f32 %v1123_v55 }
 0x27b   : > { %1613 = vpow2.f32 %v1125_v9 }
 0x27c   : > { %988 = vmax.xlane.f32.xlu1 %v987_v32 }
 0x27d   : > { %v962_v54 = vpop.xlane.xlu0 %961 }
 0x27e   : > { %v1049_v19 = vsub.f32 %v2155_v21, %v962_v54  ;;  %v1050_v6 = vsub.f32 %v2157_v22, %v962_v54  ;;  %v2344_v22 = vpop.f32.mrf.mxu0 }
 0x27f   : > { %2651 = vst [vmem:[#allocation24_spill] sm:$0xff] %v2344_v22 }
 0x280   : > { %v1127_v14 = vmul.f32 1.442695, %v1049_v19  ;;  %v1129_v63 = vmul.f32 1.442695, %v1050_v6  ;;  %v2330_v59 = vpop.eup %1611  ;;  %v2653_v6 = vmov 0  }
 0x281   : > { %v2332_v13 = vpop.eup %1613 }
 0x282   : > { %1615 = vpow2.f32 %v1127_v14  ;;  %1030 = vmax.xlane.f32.xlu0 %v1029_v4  ;;  %v2346_v14 = vpop.f32.mrf.mxu1 }
 0x283   : > { %1617 = vpow2.f32 %v1129_v63  ;;  %2652 = vst [vmem:[#allocation25_spill] sm:$0xff] %v2346_v14  ;;  %v990_v63 = vmax.f32 %v2344_v22, %v2346_v14 }
 0x288   : > { %v2334_v2 = vpop.eup %1615 }
 0x289   : > { %v2336_v32 = vpop.eup %1617 }
 0x28d   : > { %v2342_v21 = vpop.xlane.xlu0 %1009 }
 0x293   : > { %991 = vmax.xlane.f32.xlu2 %v990_v63 }
 0x295   : > { %v965_v9 = vpop.xlane.xlu0 %964 }
 0x296   : > { %515 = vperm.xlu0 %1583, %v2242_v60   ;;  %v1051_v4 = vsub.f32 %v2163_v25, %v965_v9  ;;  %v1052_v55 = vsub.f32 %v2165_v26, %v965_v9 }
 0x298   : > { %v1131_v54 = vmul.f32 1.442695, %v1051_v4  ;;  %v1133_v16 = vmul.f32 1.442695, %v1052_v55 }
 0x29a   : > { %1619 = vpow2.f32 %v1131_v54 }
 0x29b   : > { %1621 = vpow2.f32 %v1133_v16 }
 0x29d   : > { %v1013_v19 = vpop.xlane.xlu0 %1012 }
 0x29e   : > { %1586 = vset.pattern.permute.xlu0 %v2653_v6  ;;  %v1083_v60 = vsub.f32 %v2187_v36, %v1013_v19  ;;  %v1084_v22 = vsub.f32 %v2189_v37, %v1013_v19  ;;  %v2382_v19 = vpop.f32.mrf.mxu3 }
 0x2a0   : > { %v1195_v25 = vmul.f32 1.442695, %v1083_v60  ;;  %v2358_v26 = vpop.eup %1619  ;;  %v1197_v55 = vmul.f32 1.442695, %v1084_v22  ;;  %v2388_v60 = vpop.f32.mrf.mxu0 }
 0x2a1   : > { %2658 = vst [vmem:[#allocation30_spill] sm:$0xff] %v2388_v60 }
 0x2a5   : > { %v968_v49 = vpop.xlane.xlu0 %967 }
 0x2a6   : > { %v1053_v48 = vsub.f32 %v2169_v27, %v968_v49  ;;  %v1054_v30 = vsub.f32 %v2171_v28, %v968_v49  ;;  %v2362_v49 = vpop.eup %1621 }
 0x2a8   : > { %v1135_v14 = vmul.f32 1.442695, %v1053_v48  ;;  %v1137_v63 = vmul.f32 1.442695, %v1054_v30 }
 0x2aa   : > { %1623 = vpow2.f32 %v1135_v14  ;;  %v2380_v14 = vpop.f32.mrf.mxu2 }
 0x2ab   : > { %1625 = vpow2.f32 %v1137_v63 }
 0x2ac   : > { %1627 = vpow2.f32 %v1195_v25 }
 0x2ad   : > { %v1016_v6 = vpop.xlane.xlu0 %1015  ;;  %1629 = vpow2.f32 %v1197_v55 }
 0x2ae   : > { %v1085_v9 = vsub.f32 %v2203_v44, %v1016_v6  ;;  %v1086_v27 = vsub.f32 %v2205_v45, %v1016_v6  ;;  %v1032_v6 = vmax.f32 %v2380_v14, %v2382_v19 }
 0x2b0   : > { %v2364_v48 = vpop.eup %1623  ;;  %v1199_v28 = vmul.f32 1.442695, %v1085_v9  ;;  %v1201_v30 = vmul.f32 1.442695, %v1086_v27  ;;  %v2394_v9 = vpop.f32.mrf.mxu1 }
 0x2b1   : > { %v2366_v36 = vpop.eup %1625  ;;  %2659 = vst [vmem:[#allocation31_spill] sm:$0xff] %v2394_v9  ;;  %v2396_v27 = vpop.f32.mrf.mxu0 }
 0x2b2   : > { %1631 = vpow2.f32 %v1199_v28  ;;  %v2374_v45 = vpop.eup %1627  ;;  %2660 = vst [vmem:[#allocation32_spill] sm:$0xff] %v2396_v27 }
 0x2b3   : > { %1633 = vpow2.f32 %v1201_v30  ;;  %2654 = vst [vmem:[#allocation26_spill] sm:$0xff] %v2374_v45  ;;  %v2376_v54 = vpop.eup %1629  ;;  %v993_v30 = vmax.f32 %v2388_v60, %v2394_v9 }
 0x2b4   : > { %2655 = vst [vmem:[#allocation27_spill] sm:$0xff] %v2376_v54 }
 0x2b5   : > { %v2372_v44 = vpop.xlane.xlu0 %970 }
 0x2b8   : > { %v2378_v22 = vpop.eup %1631  ;;  %v2403_v16 = vpop.f32.mrf.mxu1 }
 0x2b9   : > { %2656 = vst [vmem:[#allocation28_spill] sm:$0xff] %v2378_v22  ;;  %v2384_v4 = vpop.eup %1633  ;;  %v996_v22 = vmax.f32 %v2396_v27, %v2403_v16  ;;  %v2410_v29 = vpop.f32.mrf.mxu0 }
 0x2ba   : > { %2657 = vst [vmem:[#allocation29_spill] sm:$0xff] %v2384_v4 }
 0x2bb   : > { %2661 = vst [vmem:[#allocation33_spill] sm:$0xff] %v2403_v16 }
 0x2bc   : > { %2662 = vst [vmem:[#allocation34_spill] sm:$0xff] %v2410_v29  ;;  %v986_v60 = vpop.xlane.xlu2 %985 }
 0x2bd   : > { %v1019_v55 = vpop.xlane.xlu0 %1018 }
 0x2be   : > { %v1087_v63 = vsub.f32 %v2221_v3, %v1019_v55  ;;  %v1088_v25 = vsub.f32 %v2223_v5, %v1019_v55 }
 0x2c0   : > { %1033 = vmax.xlane.f32.xlu0 %v1032_v6  ;;  %v1203_v37 = vmul.f32 1.442695, %v1087_v63  ;;  %v1205_v54 = vmul.f32 1.442695, %v1088_v25 }
 0x2c2   : > { %1635 = vpow2.f32 %v1203_v37 }
 0x2c3   : > { %1637 = vpow2.f32 %v1205_v54 }
 0x2c5   : > { %v2398_v28 = vpop.xlane.xlu0 %973 }
 0x2c8   : > { %994 = vmax.xlane.f32.xlu0 %v993_v30  ;;  %v2412_v30 = vpop.f32.mrf.mxu1  ;;  %v2414_v63 = vpop.eup %1635 }
 0x2c9   : > { %2663 = vst [vmem:[#allocation35_spill] sm:$0xff] %v2412_v30 }
 0x2cd   : > { %v1022_v4 = vpop.xlane.xlu0 %1021 }
 0x2ce   : > { %v1089_v45 = vsub.f32 %v2245_v61, %v1022_v4  ;;  %v1090_v6 = vsub.f32 %v2247_v62, %v1022_v4  ;;  %v999_v61 = vmax.f32 %v2410_v29, %v2412_v30  ;;  %v2418_v62 = vpop.eup %1637  ;;  %v1065_v29 = vsub.f32 %v2225_v12, %v986_v60  ;;  %v980_v12 = vpop.xlane.xlu1 %979 }
 0x2d0   : > { %v1207_v9 = vmul.f32 1.442695, %v1089_v45  ;;  %v1209_v3 = vmul.f32 1.442695, %v1090_v6  ;;  %997 = vmax.xlane.f32.xlu0 %v996_v22  ;;  %v2424_v45 = vpop.f32.mrf.mxu0 }
 0x2d1   : > { %v1002_v55 = vmax.f32 %v2424_v45, %v2159_v23 }
 0x2d2   : > { %1639 = vpow2.f32 %v1207_v9 }
 0x2d3   : > { %1641 = vpow2.f32 %v1209_v3 }
 0x2d5   : > { %v977_v5 = vpop.xlane.xlu0 %976 }
 0x2d8   : > { %v2420_v4 = vpop.eup %1639  ;;  %1000 = vmax.xlane.f32.xlu0 %v999_v61  ;;  %v2434_v3 = vpop.f32.mrf.mxu0 }
 0x2d9   : > { %v2422_v37 = vpop.eup %1641  ;;  %v1005_v54 = vmax.f32 %v2434_v3, %v2167_v0 }
 0x2dd   : > { %v1025_v25 = vpop.xlane.xlu0 %1024 }
 0x2de   : > { %v1091_v9 = vsub.f32 %v2270_v8, %v1025_v25  ;;  %v1092_v6 = vsub.f32 %v2272_v20, %v1025_v25  ;;  %v1066_v20 = vsub.f32 %v2227_v15, %v986_v60  ;;  %v1159_v25 = vmul.f32 1.442695, %v1065_v29 }
 0x2df   : > { %v1059_v15 = vsub.f32 %v2197_v41, %v977_v5  ;;  %v1060_v29 = vsub.f32 %v2199_v42, %v977_v5  ;;  %v1057_v42 = vsub.f32 %v2191_v38, %v2398_v28  ;;  %v1056_v38 = vsub.f32 %v2183_v34, %v2372_v44 }
 0x2e0   : > { %1003 = vmax.xlane.f32.xlu0 %v1002_v55  ;;  %v1211_v61 = vmul.f32 1.442695, %v1091_v9  ;;  %v1213_v16 = vmul.f32 1.442695, %v1092_v6  ;;  %v1161_v9 = vmul.f32 1.442695, %v1066_v20 }
 0x2e1   : > { %v1147_v41 = vmul.f32 1.442695, %v1059_v15  ;;  %v1143_v15 = vmul.f32 1.442695, %v1057_v42  ;;  %v2666_v42 = vpack.c.bf16 %v2334_v2, %v2330_v59  ;;  %v2671_v59 = vpack.c.bf16 %v2283_v51, %v2278_v40 }
 0x2e2   : > { %1643 = vpow2.f32 %v1211_v61  ;;  %v1062_v61 = vsub.f32 %v2209_v47, %v980_v12  ;;  %v378_v47 = vld [vmem:[%s2599_s7] sm:$0x1f] }
 0x2e3   : > { %1645 = vpow2.f32 %v1213_v16 }
 0x2e5   : > { %v1028_v27 = vpop.xlane.xlu0 %1027 }
 0x2e6   : > { %v1093_v22 = vsub.f32 %v2292_v7, %v1028_v27  ;;  %v1094_v30 = vsub.f32 %v2294_v50, %v1028_v27 }
 0x2e8   : > { %v1215_v8 = vmul.f32 1.442695, %v1093_v22  ;;  %v1217_v55 = vmul.f32 1.442695, %v1094_v30  ;;  %1006 = vmax.xlane.f32.xlu0 %v1005_v54  ;;  %v2442_v23 = vpop.eup %1643 }
 0x2e9   : > { %v2446_v27 = vpop.eup %1645 }
 0x2ea   : > { %1647 = vpow2.f32 %v1215_v8  ;;  %v1149_v8 = vmul.f32 1.442695, %v1060_v29  ;;  %v1141_v29 = vmul.f32 1.442695, %v1056_v38  ;;  %v2676_v38 = vld [vmem:[#allocation20_spill] sm:$0xff] }
 0x2eb   : > { %1649 = vpow2.f32 %v1217_v55 }
 0x2ec   : > { %1651 = vpow2.f32 %v1159_v25 }
 0x2ed   : > { %v983_v6 = vpop.xlane.xlu0 %982  ;;  %1653 = vpow2.f32 %v1161_v9  ;;  %v1153_v9 = vmul.f32 1.442695, %v1062_v61 }
 0x2ee   : > { %v1063_v7 = vsub.f32 %v2215_v52, %v983_v6  ;;  %v1064_v50 = vsub.f32 %v2217_v53, %v983_v6  ;;  %v1061_v53 = vsub.f32 %v2207_v46, %v980_v12  ;;  %v1058_v46 = vsub.f32 %v2193_v39, %v2398_v28 }
 0x2f0   : > { %v2448_v22 = vpop.eup %1647  ;;  %v1155_v16 = vmul.f32 1.442695, %v1063_v7  ;;  %v1157_v60 = vmul.f32 1.442695, %v1064_v50  ;;  %v1151_v20 = vmul.f32 1.442695, %v1061_v53  ;;  %v1055_v50 = vsub.f32 %v2181_v33, %v2372_v44 }
 0x2f1   : > { %v2451_v30 = vpop.eup %1649  ;;  %v1257_v52 = vpack.c.bf16 %v2448_v22, %v2442_v23  ;;  %v1145_v39 = vmul.f32 1.442695, %v1058_v46  ;;  %v2677_v23 = vld [vmem:[#allocation21_spill] sm:$0xff] }
 0x2f2   : > { %1655 = vpow2.f32 %v1155_v16  ;;  %v1258_v54 = vpack.c.bf16 %v2451_v30, %v2446_v27  ;;  %v1652_v55 = vpop.eup %1651  ;;  %v1139_v16 = vmul.f32 1.442695, %v1055_v50  ;;  %v2675_v50 = vpack.c.bf16 %v2422_v37, %v2418_v62  ;;  %v2679_v27 = vld [vmem:[#allocation26_spill] sm:$0xff] }
 0x2f3   : > { %1657 = vpow2.f32 %v1157_v60  ;;  %v1654_v25 = vpop.eup %1653  ;;  %v1082_v22 = vsub.f32 %v2677_v23, %v2342_v21 }
 0x2f4   : > { %1659 = vpow2.f32 %v1147_v41 }
 0x2f5   : > { %1661 = vpow2.f32 %v1149_v8  ;;  %v1031_v46 = vpop.xlane.xlu0 %1030 }
 0x2f6   : > { %1663 = vpow2.f32 %v1151_v20  ;;  %v1096_v2 = vsub.f32 %v2324_v56, %v1031_v46 }
 0x2f7   : > { %1665 = vpow2.f32 %v1153_v9  ;;  %v2664_v9 = vpack.c.bf16 %v2364_v48, %v2358_v26  ;;  %v2669_v26 = vpack.c.bf16 %v2313_v43, %v2304_v58  ;;  %v2672_v58 = vpack.c.bf16 %v2255_v31, %v2249_v18 }
 0x2f8   : > { %v1656_v6 = vpop.eup %1655  ;;  %1667 = vpow2.f32 %v1143_v15  ;;  %v1081_v15 = vsub.f32 %v2676_v38, %v2342_v21 }
 0x2f9   : > { %v1658_v5 = vpop.eup %1657  ;;  %v1243_v7 = vpack.c.bf16 %v1652_v55, %v1656_v6  ;;  %1669 = vpow2.f32 %v1145_v39  ;;  %v2665_v6 = vpack.c.bf16 %v2366_v36, %v2362_v49  ;;  %v2670_v49 = vpack.c.bf16 %v2280_v1, %v2274_v10  ;;  %v2678_v39 = vld [vmem:[#allocation28_spill] sm:$0xff] }
 0x2fa   : > { %v1244_v12 = vpack.c.bf16 %v1654_v25, %v1658_v5  ;;  %v1660_v28 = vpop.eup %1659  ;;  %1671 = vpow2.f32 %v1139_v16  ;;  %v2667_v5 = vpack.c.bf16 %v2336_v32, %v2332_v13  ;;  %v1095_v13 = vsub.f32 %v2322_v11, %v1031_v46  ;;  %v524_v46 = vpop.permute.xlu1 %523 }
 0x2fb   : > { %1261 = vmatpush.bf16.xpose.msrb.mxu2 %v1243_v7  ;;  %v1662_v60 = vpop.eup %1661  ;;  %1673 = vpow2.f32 %v1141_v29  ;;  %v2668_v7 = vpack.c.bf16 %v2310_v17, %v2300_v57  ;;  %v1221_v57 = vmul.f32 1.442695, %v1096_v2  ;;  %v2673_v1 = vpack.c.bf16 %v2258_v35, %v2253_v24 }
 0x2fc   : > { %1274 = vmatpush.bf16.xpose.msrb.mxu3 %v1244_v12  ;;  %540 = vperm.xlu0 %1586, %v378_v47   ;;  %v1664_v53 = vpop.eup %1663  ;;  %v1219_v32 = vmul.f32 1.442695, %v1095_v13  ;;  %v2674_v35 = vpack.c.bf16 %v2420_v4, %v2414_v63  ;;  %v2680_v30 = vpack.c.bf16 %v2678_v39, %v2679_v27  ;;  %v2682_v63 = vld [vmem:[#allocation27_spill] sm:$0xff]  ;;  %v1193_v16 = vmul.f32 1.442695, %v1082_v22 }
 0x2fd   : > { %v1666_v61 = vpop.eup %1665  ;;  %v1241_v41 = vpack.c.bf16 %v1664_v53, %v1660_v28  ;;  %v2681_v28 = vld [vmem:[#allocation29_spill] sm:$0xff] }
 0x2fe   : > { %v1242_v33 = vpack.c.bf16 %v1666_v61, %v1662_v60  ;;  %v1668_v34 = vpop.eup %1667  ;;  %1675 = vpow2.f32 %v1219_v32  ;;  %v2683_v4 = vpack.c.bf16 %v2681_v28, %v2682_v63  ;;  %v2684_v61 = vld [vmem:[#allocation19_spill] sm:$0xff]  ;;  %v2692_v32 = vld [vmem:[#allocation16_spill] sm:$0xff] }
 0x2ff   : > { %v1670_v44 = vpop.eup %1669  ;;  %1677 = vpow2.f32 %v1221_v57  ;;  %v527_v57 = vmul.f32 %v524_v46, %v2692_v32 }
 0x300   : > { %v1672_v8 = vpop.eup %1671 }
 0x301   : > { %v1674_v55 = vpop.eup %1673  ;;  %v1239_v20 = vpack.c.bf16 %v1668_v34, %v1672_v8 }
 0x302   : > { %v1240_v25 = vpack.c.bf16 %v1670_v44, %v1674_v55  ;;  %v2686_v44 = vld [vmem:[#allocation12_spill] sm:$0xff]  ;;  %v2687_v55 = vld [vmem:[#allocation34_spill] sm:$0xff] }
 0x303   : > { %1262 = vmatpush.bf16.xpose.msrb.mxu2 %v1241_v41 }
 0x304   : > { %1275 = vmatpush.bf16.xpose.msrb.mxu3 %v1242_v33  ;;  %v1676_v11 = vpop.eup %1675  ;;  %v2685_v33 = vld [vmem:[#allocation11_spill] sm:$0xff] }
 0x305   : > { %v1678_v36 = vpop.eup %1677 }
 0x308   : > { %v516_v48 = vpop.permute.xlu0 %515 }
 0x30b   : > { %1263 = vmatpush.bf16.xpose.msrb.mxu2 %v1239_v20 }
 0x30c   : > { %1276 = vmatpush.bf16.xpose.msrb.mxu3 %v1240_v25 }
 0x313   : > { %1264 = vmatpush.bf16.xpose.msrb.mxu2 %v2664_v9  ;;  %v2688_v9 = vld [vmem:[#allocation13_spill] sm:$0xff] }
 0x314   : > { %1277 = vmatpush.bf16.xpose.msrb.mxu3 %v2665_v6  ;;  %v2689_v6 = vld [vmem:[#allocation14_spill] sm:$0xff] }
 0x31b   : > { %1265 = vmatpush.bf16.xpose.msrb.mxu2 %v2666_v42  ;;  %v2690_v42 = vld [vmem:[#allocation35_spill] sm:$0xff] }
 0x31c   : > { %1278 = vmatpush.bf16.xpose.msrb.mxu3 %v2667_v5 }
 0x323   : > { %1266 = vmatpush.bf16.xpose.msrb.mxu2 %v2668_v7 }
 0x324   : > { %1279 = vmatpush.bf16.xpose.msrb.mxu3 %v2669_v26 }
 0x32b   : > { %1267 = vmatpush.bf16.xpose.msrb.mxu2 %v2670_v49  ;;  %v2691_v49 = vld [vmem:[#allocation15_spill] sm:$0xff] }
 0x32c   : > { %1280 = vmatpush.bf16.xpose.msrb.mxu3 %v2671_v59  ;;  %v526_v59 = vmul.f32 %v524_v46, %v2691_v49 }
 0x333   : > { %v1034_v17 = vpop.xlane.xlu0 %1033  ;;  %1268 = vmatpush.bf16.xpose.msrb.mxu2 %v2672_v58 }
 0x334   : > { %v1097_v43 = vsub.f32 %v2380_v14, %v1034_v17  ;;  %v1098_v10 = vsub.f32 %v2382_v19, %v1034_v17  ;;  %1281 = vmatpush.bf16.xpose.msrb.mxu3 %v2673_v1  ;;  %v2693_v1 = vld [vmem:[#allocation32_spill] sm:$0xff] }
 0x336   : > { %v1223_v40 = vmul.f32 1.442695, %v1097_v43  ;;  %v1225_v51 = vmul.f32 1.442695, %v1098_v10 }
 0x338   : > { %1679 = vpow2.f32 %v1223_v40 }
 0x339   : > { %1681 = vpow2.f32 %v1225_v51  ;;  %v2694_v51 = vld [vmem:[#allocation17_spill] sm:$0xff] }
 0x33b   : > { %v2505_v56 = vpop.xlane.xlu0 %994 }
 0x33e   : > { %v1680_v18 = vpop.eup %1679 }
 0x33f   : > { %v1682_v31 = vpop.eup %1681  ;;  %v1259_v47 = vpack.c.bf16 %v1680_v18, %v1676_v11 }
 0x340   : > { %v1260_v14 = vpack.c.bf16 %v1682_v31, %v1678_v36  ;;  %v2695_v36 = vld [vmem:[#allocation33_spill] sm:$0xff] }
 0x341   : > { %1287 = vmatpush.bf16.xpose.msra.mxu2 %v1259_v47  ;;  %v2696_v47 = vld [vmem:[#allocation18_spill] sm:$0xff] }
 0x342   : > { %1300 = vmatpush.bf16.xpose.msra.mxu3 %v1260_v14 }
 0x343   : > { %v2507_v19 = vpop.xlane.xlu0 %997 }
 0x344   : > { %v1074_v18 = vsub.f32 %v2695_v36, %v2507_v19 }
 0x349   : > { %1288 = vmatpush.bf16.xpose.msra.mxu2 %v1257_v52  ;;  %v510_v52 = vpop.permute.xlu2 %509 }
 0x34a   : > { %1301 = vmatpush.bf16.xpose.msra.mxu3 %v1258_v54  ;;  %v1191_v54 = vmul.f32 1.442695, %v1081_v15  ;;  %v512_v34 = vmul.f32 %v510_v52, %v2685_v33  ;;  %v513_v8 = vmul.f32 %v510_v52, %v2686_v44  ;;  %v2701_v33 = vld [vmem:[#allocation22_spill] sm:$0xff] }
 0x34b   : > { %v1001_v24 = vpop.xlane.xlu0 %1000 }
 0x34c   : > { %1683 = vpow2.f32 %v1191_v54  ;;  %v1075_v20 = vsub.f32 %v2687_v55, %v1001_v24  ;;  %v1076_v5 = vsub.f32 %v2690_v42, %v1001_v24  ;;  %v2697_v24 = vld [vmem:[#allocation30_spill] sm:$0xff]  ;;  %v989_v54 = vpop.xlane.xlu1 %988 }
 0x34d   : > { %1685 = vpow2.f32 %v1193_v16 }
 0x34e   : > { %v1179_v13 = vmul.f32 1.442695, %v1075_v20  ;;  %v1181_v43 = vmul.f32 1.442695, %v1076_v5 }
 0x351   : > { %1289 = vmatpush.bf16.xpose.msra.mxu2 %v2674_v35  ;;  %v532_v25 = vpop.permute.xlu2 %531  ;;  %v1071_v35 = vsub.f32 %v2697_v24, %v2505_v56 }
 0x352   : > { %1302 = vmatpush.bf16.xpose.msra.mxu3 %v2675_v50  ;;  %v1684_v26 = vpop.eup %1683  ;;  %v534_v11 = vmul.f32 %v532_v25, %v2694_v51  ;;  %v535_v14 = vmul.f32 %v532_v25, %v2696_v47 }
 0x353   : > { %v1004_v12 = vpop.xlane.xlu0 %1003  ;;  %v1686_v2 = vpop.eup %1685  ;;  %v1171_v27 = vmul.f32 1.442695, %v1071_v35  ;;  %v1319_v35 = vstv %s372_s21 }
 0x354   : > { %v1077_v29 = vsub.f32 %v2424_v45, %v1004_v12  ;;  %v1078_v41 = vsub.f32 %v2684_v61, %v1004_v12  ;;  %v2698_v12 = vld [vmem:[#allocation31_spill] sm:$0xff] }
 0x355   : > { %v1072_v38 = vsub.f32 %v2698_v12, %v2505_v56  ;;  %v1324_v12 = vld.sshfl [vmem:[#allocation1 + $0x8] sm:$0xff pattern:$0x75316420] }
 0x356   : > { %v1183_v45 = vmul.f32 1.442695, %v1077_v29  ;;  %v1185_v7 = vmul.f32 1.442695, %v1078_v41 }
 0x357   : > { %v1173_v28 = vmul.f32 1.442695, %v1072_v38 }
 0x359   : > { %1290 = vmatpush.bf16.xpose.msra.mxu2 %v2680_v30  ;;  %v992_v52 = vpop.xlane.xlu2 %991 }
 0x35a   : > { %1303 = vmatpush.bf16.xpose.msra.mxu3 %v2683_v4 }
 0x35b   : > { %v1007_v62 = vpop.xlane.xlu0 %1006 }
 0x35c   : > { %v1079_v37 = vsub.f32 %v2434_v3, %v1007_v62  ;;  %v1080_v60 = vsub.f32 %v2167_v0, %v1007_v62  ;;  %v518_v3 = vmul.f32 %v516_v48, %v2688_v9  ;;  %v519_v0 = vmul.f32 %v516_v48, %v2689_v6  ;;  %v2699_v62 = vld [vmem:[#allocation24_spill] sm:$0xff] }
 0x35d   : > { %v1073_v48 = vsub.f32 %v2693_v1, %v2507_v19  ;;  %v1177_v19 = vmul.f32 1.442695, %v1074_v18 }
 0x35e   : > { %v1187_v21 = vmul.f32 1.442695, %v1079_v37  ;;  %v1189_v53 = vmul.f32 1.442695, %v1080_v60  ;;  %v520_v17 = vadd.f32 %v518_v3, %v512_v34  ;;  %v521_v58 = vadd.f32 %v519_v0, %v513_v8  ;;  %v2700_v60 = vld [vmem:[#allocation25_spill] sm:$0xff]  ;;  %v2702_v8 = vld [vmem:[#allocation23_spill] sm:$0xff] }
 0x35f   : > { %v1175_v22 = vmul.f32 1.442695, %v1073_v48  ;;  %v1069_v37 = vsub.f32 %v2699_v62, %v992_v52  ;;  %v1070_v56 = vsub.f32 %v2700_v60, %v992_v52  ;;  %v1067_v34 = vsub.f32 %v2701_v33, %v989_v54 }
 0x360   : > { %1687 = vpow2.f32 %v1187_v21  ;;  %v528_v15 = vadd.f32 %v526_v59, %v520_v17  ;;  %v529_v23 = vadd.f32 %v527_v57, %v521_v58  ;;  %v1068_v55 = vsub.f32 %v2702_v8, %v989_v54 }
 0x361   : > { %1689 = vpow2.f32 %v1189_v53  ;;  %v1167_v9 = vmul.f32 1.442695, %v1069_v37  ;;  %v1169_v3 = vmul.f32 1.442695, %v1070_v56  ;;  %v1163_v0 = vmul.f32 1.442695, %v1067_v34 }
 0x362   : > { %1691 = vpow2.f32 %v1183_v45  ;;  %v536_v63 = vadd.f32 %v534_v11, %v528_v15  ;;  %v537_v4 = vadd.f32 %v535_v14, %v529_v23  ;;  %v1165_v5 = vmul.f32 1.442695, %v1068_v55  ;;  %v1323_v23 = vld.sshfl [vmem:[#allocation1] sm:$0xff pattern:$0x75316420] }
 0x363   : > { %1693 = vpow2.f32 %v1185_v7 }
 0x364   : > { %1695 = vpow2.f32 %v1179_v13 }
 0x365   : > { %1697 = vpow2.f32 %v1181_v43 }
 0x366   : > { %v1688_v10 = vpop.eup %1687  ;;  %1699 = vpow2.f32 %v1175_v22 }
 0x367   : > { %v1690_v40 = vpop.eup %1689  ;;  %v1251_v31 = vpack.c.bf16 %v1684_v26, %v1688_v10  ;;  %1701 = vpow2.f32 %v1177_v19 }
 0x368   : > { %v1252_v50 = vpack.c.bf16 %v1686_v2, %v1690_v40  ;;  %v1692_v39 = vpop.eup %1691  ;;  %1703 = vpow2.f32 %v1171_v27 }
 0x369   : > { %1291 = vmatpush.bf16.xpose.msra.mxu2 %v1251_v31  ;;  %v1694_v30 = vpop.eup %1693  ;;  %1705 = vpow2.f32 %v1173_v28 }
 0x36a   : > { %1304 = vmatpush.bf16.xpose.msra.mxu3 %v1252_v50  ;;  %v1696_v16 = vpop.eup %1695  ;;  %1707 = vpow2.f32 %v1167_v9 }
 0x36b   : > { %v1698_v21 = vpop.eup %1697  ;;  %v1249_v41 = vpack.c.bf16 %v1692_v39, %v1696_v16  ;;  %1709 = vpow2.f32 %v1169_v3 }
 0x36c   : > { %v1250_v44 = vpack.c.bf16 %v1694_v30, %v1698_v21  ;;  %v1700_v6 = vpop.eup %1699  ;;  %1711 = vpow2.f32 %v1163_v0 }
 0x36d   : > { %v1702_v42 = vpop.eup %1701  ;;  %1713 = vpow2.f32 %v1165_v5 }
 0x36e   : > { %v541_v29 = vpop.permute.xlu0 %540  ;;  %v1704_v45 = vpop.eup %1703 }
 0x36f   : > { %v543_v53 = vadd.f32 %v541_v29, %v536_v63  ;;  %v544_v61 = vadd.f32 %v541_v29, %v537_v4  ;;  %v1706_v46 = vpop.eup %1705  ;;  %v1247_v7 = vpack.c.bf16 %v1700_v6, %v1704_v45 }
 0x370   : > { %v1248_v26 = vpack.c.bf16 %v1702_v42, %v1706_v46  ;;  %v1708_v49 = vpop.eup %1707 }
 0x371   : > { %v1227_v20 = vpack.c.bf16 %v543_v53, %v543_v53  ;;  %v1228_v25 = vpack.c.bf16 %v544_v61, %v544_v61  ;;  %1292 = vmatpush.bf16.xpose.msra.mxu2 %v1249_v41  ;;  %v1710_v59 = vpop.eup %1709 }
 0x372   : > { %1305 = vmatpush.bf16.xpose.msra.mxu3 %v1250_v44  ;;  %v1712_v13 = vpop.eup %1711 }
 0x373   : > { %1269 = vmatmul.bf16.vlgmr.msrb.gmra.mxu2 %v1227_v20  ;;  %1282 = vmatmul.bf16.vlgmr.msrb.gmra.mxu3 %v1228_v25  ;;  %v1714_v2 = vpop.eup %1713  ;;  %v1245_v32 = vpack.c.bf16 %v1708_v49, %v1712_v13 }
 0x374   : > { %v1246_v57 = vpack.c.bf16 %v1710_v59, %v1714_v2 }
 0x379   : > { %1293 = vmatpush.bf16.xpose.msra.mxu2 %v1247_v7 }
 0x37a   : > { %1306 = vmatpush.bf16.xpose.msra.mxu3 %v1248_v26 }
 0x381   : > { %1294 = vmatpush.bf16.xpose.msra.mxu2 %v1245_v32 }
 0x382   : > { %1307 = vmatpush.bf16.xpose.msra.mxu3 %v1246_v57 }
 0x388   : > { %1295 = vmatmul.bf16.vlgmr.msra.gmra.mxu2 %v1227_v20 }
 0x389   : > { %1308 = vmatmul.bf16.vlgmr.msra.gmra.mxu3 %v1228_v25 }
 0x3f6   : > { %v1270_v17 = vpop.f32.mrf.mxu2  ;;  %v1283_v58 = vpop.f32.mrf.mxu3 }
 0x3f7   : > { %v1284_v1 = vadd.f32 %v1283_v58, %v1270_v17 }
 0x3f9   : > { %1715 = vrcp.f32 %v1284_v1 }
 0x3fe   : > { %v1272_v43 = vpop.f32.mrf.mxu2  ;;  %v1285_v10 = vpop.f32.mrf.mxu3 }
 0x3ff   : > { %v1716_v11 = vpop.eup %1715 }
 0x400   : > { %v1315_v36 = vperm.slane %v1716_v11, 4 }
 0x402   : > { %v1317_v14 = vmul.f32 %v1315_v36, %v1284_v1 }
 0x404   : > { %v1320_v38 = vmul.f32 %v1319_v35, %v1317_v14 }
 0x406   : > { %v1327_v52 = vadd.f32 %v1323_v23, %v1320_v38 }
 0x40b   : > { %v1296_v48 = vpop.f32.mrf.mxu2 }
 0x40c   : > { %v1309_v40 = vpop.f32.mrf.mxu3 }
 0x40d   : > { %v1310_v51 = vadd.f32 %v1309_v40, %v1296_v48 }
 0x40f   : > { %1717 = vrcp.f32 %v1310_v51 }
 0x413   : > { %v1298_v18 = vpop.f32.mrf.mxu2 }
 0x414   : > { %v1311_v31 = vpop.f32.mrf.mxu3 }
 0x415   : > { %v1718_v47 = vpop.eup %1717 }
 0x416   : > { %v1316_v24 = vperm.slane %v1718_v47, 4 }
 0x418   : > { %v1318_v50 = vmul.f32 %v1316_v24, %v1310_v51 }
 0x41a   : > { %v1321_v15 = vmul.f32 %v1319_v35, %v1318_v50 }
 0x41c   : > { %v1328_v22 = vadd.f32 %v1324_v12, %v1321_v15 }
 0x41e   : > { %v1331_v19 = vrot.slane %v1328_v22, 4 }
 0x420   : > { %v1333_v39 = vsel %vm1332_vm2, %v1327_v52, %v1331_v19 }
 0x421   : > { %1335 = vst [vmem:[%s366_s27] sm:$0xff] %v1333_v39 }
 0x422   : > { %1776 = shalt.err (!%p1773_p7)
}
 0x423   : > { %1524 = dma.vmem_to_hbm [thread:$0]  (%p1924_p11), %s1351_s28, 128, %s1353_s19, %s1337_s8  }
 0x424 PF: > { %s1364_s24 = sand.u32 1, %s1803_s11   ;;  %p2703_p5 = scmp.ge.s32.totalorder %s1815_s14, 2 }
 0x425   : > { %s1365_s18 = scalar_lea.sflag [#allocation5], %s1364_s24 }
 0x426   : > { %p1531_p8 = pnand %p2703_p5, %p1928_p12 }
 0x428   : > { %p1532_p10 = pneg %p1531_p8 }
 0x42a   : > { %1798 = dma.done.wait (%p1532_p10), %s1365_s18, 128  }
 0x42b   : > { %1800 = vsyncadd (%p1532_p10), %s1365_s18, 4294967168  ;;  %s2704_s25 = sld [smem:[#allocation9_spill]]  ;;  %p23_p2 = scmp.ge.s32.totalorder %s1899_s16, 4  }
 0x42c   : > { %s2705_s13 = sld [smem:[#allocation10_spill]]  ;;  %s2706_s11 = smov %s1807_s12 }
 0x42d   : > { %s2708_s14 = smov %s1899_s16  ;;  %25 = sbr.rel (!%p23_p2) target bundleno = 7 (0x7), region = 104 }
 0x431   : > { %s2707_s12 = smov %s2704_s25 }
 0x432   :  { %1371 = vsyncpa [#allocation4], 1 }
 0x433   :  { %1373 = vsyncpa [#allocation4 + $0x1], 1 }
 0x434   :  { %1374 = vsyncpa [#allocation5], 1 }
 0x435   :  { %1376 = vsyncpa [#allocation5 + $0x1], 1 }

</bundles_post_ra>
